<compile_context>
chip_gen: v7x
topology: tpu7x:2x2x1
jax: 0.10.0
libtpu: 0.0.40
codegen_flags: <defaults>
</compile_context>

<pallas_src>
import numpy as np
import jax
import jax.numpy as jnp
from jax.experimental import pallas as pl
from jax.experimental.pallas import tpu as pltpu

PAD_ID = 0  # Vocab.PAD_ID


def position_encoding(sentence_size, embedding_size):
    """Standard MemN2N position encoding, shape [sentence_size, embedding_size]."""
    enc = np.ones((embedding_size, sentence_size), dtype=np.float32)
    ls = sentence_size + 1
    le = embedding_size + 1
    for i in range(1, le):
        for j in range(1, ls):
            enc[i - 1, j - 1] = (i - (le - 1) / 2) * (j - (ls - 1) / 2)
    enc = 1 + 4 * enc / embedding_size / sentence_size
    return np.transpose(enc).astype(np.float32)  # [S, D]


def _hop_loop_kernel(u0_ref, oh_ref, km_ref, vm_ref, ta_ref, tc_ref, out_ref):
    """One batch tile: full num_hops memory-network loop, single packed store."""
    TB, D = u0_ref.shape
    H = km_ref.shape[1]
    M = km_ref.shape[2]

    u = u0_ref[...]                        # [TB, D]     running controller state
    onehot = oh_ref[...]                   # [TB*M, T1p] one-hot(rel_time)

    inv_h = 1.0 / H                        # static constant (no runtime divide)
    p_list, o_list = [], []
    p_sum = jnp.zeros((TB, M), jnp.float32)
    logit_sum = jnp.zeros((TB, M), jnp.float32)

    for i in range(H):                     # num_hops is static -> unrolled
        # temporal-embedding gather: one-hot @ table (tiny K; MXU otherwise idle)
        kt = jnp.dot(onehot, ta_ref[i],
                     preferred_element_type=jnp.float32).reshape(TB, M, D)
        vt = jnp.dot(onehot, tc_ref[i],
                     preferred_element_type=jnp.float32).reshape(TB, M, D)
        km = km_ref[:, i] + kt             # [TB, M, D]
        vm = vm_ref[:, i] + vt             # [TB, M, D]

        # logit[b, m] = sum_d key_mem * u : batched VPU multiply + lane reduce
        logit = jnp.sum(km * u[:, None, :], axis=-1)           # [TB, M]
        logit_sum = logit_sum + logit

        # softmax over memory slots (exact divide: tiny op off the DMA-bound
        # critical path; keeps tight agreement with the reference)
        mx = jnp.max(logit, axis=-1, keepdims=True)
        e = jnp.exp(logit - mx)
        p = e / jnp.sum(e, axis=-1, keepdims=True)              # [TB, M]
        p_list.append(p)
        p_sum = p_sum + p

        # o[b, d] = sum_m val_mem * p : batched VPU multiply + sublane reduce
        o = jnp.sum(vm * p[:, :, None], axis=-2)                # [TB, D]
        o_list.append(o)
        u = o + u

    # One lane-dense coalesced store per tile:
    #   [ u(D) | attns(H*M) | attn_avg(M) | attn_logit(M) | read_vector(H*D) ]
    slab = jnp.concatenate(
        [u] + p_list + [p_sum * inv_h, logit_sum * inv_h] + o_list, axis=-1)
    out_ref[...] = slab


def base_forward_pallas(q_emb, pos_enc, rel_time, key_mems, val_mems,
                        ta_tab, tc_tab, *, batch_tile=None):
    B, S, D = q_emb.shape
    _, H, M, _ = key_mems.shape
    T1 = ta_tab.shape[1]

    # --- wrapper glue (hoisted per perf review) ------------------------------
    # query-embedding reduction: kernel reads [B, D] instead of [B, S, D]+pos_enc
    u0 = jnp.sum(q_emb * pos_enc[None], axis=1)                  # [B, D]

    # pad the temporal tables' time axis to a multiple of 8 (clean MXU K dim)
    T1p = ((T1 + 7) // 8) * 8
    if T1p != T1:
        ta_tab = jnp.pad(ta_tab, ((0, 0), (0, T1p - T1), (0, 0)))
        tc_tab = jnp.pad(tc_tab, ((0, 0), (0, T1p - T1), (0, 0)))

    # batch tile: big enough to amortize the ~0.35us per-grid-step overhead,
    # small enough that double-buffered blocks fit the 32 MiB scoped VMEM.
    if batch_tile is None:
        TB = 256 if B >= 256 else max(8, ((B + 7) // 8) * 8)
    else:
        TB = batch_tile
    B_pad = ((B + TB - 1) // TB) * TB
    if B_pad != B:
        db = B_pad - B
        u0 = jnp.pad(u0, ((0, db), (0, 0)))
        rel_time = jnp.pad(rel_time, ((0, db), (0, 0)))
        key_mems = jnp.pad(key_mems, ((0, db), (0, 0), (0, 0), (0, 0)))
        val_mems = jnp.pad(val_mems, ((0, db), (0, 0), (0, 0), (0, 0)))

    # one-hot(rel_time): [B_pad*M, T1p] -- tiny vs the two [B,H,M,D] time
    # tensors it replaces; lets the kernel gather TA/TC rows with one small
    # matmul per hop instead of streaming pre-gathered embeddings from HBM.
    onehot = jax.nn.one_hot(rel_time.reshape(-1), T1p, dtype=jnp.float32)

    W = D + H * M + 2 * M + H * D          # packed output slab width
    grid = (B_pad // TB,)

    slab = pl.pallas_call(
        _hop_loop_kernel,
        out_shape=jax.ShapeDtypeStruct((B_pad, W), jnp.float32),
        grid=grid,
        in_specs=[
            pl.BlockSpec((TB, D), lambda b: (b, 0)),               # u0
            pl.BlockSpec((TB * M, T1p), lambda b: (b, 0)),         # one-hot(rel_time)
            pl.BlockSpec((TB, H, M, D), lambda b: (b, 0, 0, 0)),   # key_mems
            pl.BlockSpec((TB, H, M, D), lambda b: (b, 0, 0, 0)),   # val_mems
            pl.BlockSpec((H, T1p, D), lambda b: (0, 0, 0)),        # TA table
            pl.BlockSpec((H, T1p, D), lambda b: (0, 0, 0)),        # TC table
        ],
        out_specs=pl.BlockSpec((TB, W), lambda b: (b, 0)),
        compiler_params=pltpu.CompilerParams(
            dimension_semantics=("parallel",),   # batch tiles are independent
            vmem_limit_bytes=32 * 1024 * 1024,   # > v5e 16MiB default, < v7x 64MiB
        ),
    )(u0, onehot, key_mems, val_mems, ta_tab, tc_tab)

    slab = slab[:B]
    c0, c1 = D, D + H * M
    c2, c3 = c1 + M, c1 + 2 * M
    return dict(
        u=slab[:, :c0].reshape(B, 1, D),
        attns=slab[:, c0:c1].reshape(B, H, M),
        attn_avg=slab[:, c1:c2],
        attn_logit=slab[:, c2:c3],
        read_vector=slab[:, c3:],            # == torch.cat(read_vectors, -1)
        ctrl_hidden=None,
        lru_gamma=None,
    )


def reference_forward(q_emb, pos_enc, rel_time, key_mems, val_mems, ta_tab, tc_tab):
    """Plain-JAX mirror of the torch forward, for validation."""
    u = jnp.sum(q_emb * pos_enc[None], axis=1, keepdims=True)    # [B,1,D]
    H = key_mems.shape[1]
    logits, attns, reads = [], [], []
    for i in range(H):
        km = key_mems[:, i] + ta_tab[i][rel_time]                # [B,M,D]
        vm = val_mems[:, i] + tc_tab[i][rel_time]
        logit = jnp.sum(km * u, axis=2)                          # [B,M]
        logits.append(logit)
        p = jax.nn.softmax(logit, axis=1)
        attns.append(p)
        o = jnp.sum(vm * p[:, :, None], axis=1, keepdims=True)   # [B,1,D]
        reads.append(o[:, 0, :])
        u = o + u
    attns_s = jnp.stack(attns, 1)
    logits_s = jnp.stack(logits, 1)
    return dict(u=u, attns=attns_s, attn_avg=attns_s.mean(1),
                attn_logit=logits_s.mean(1),
                read_vector=jnp.concatenate(reads, axis=-1))


if __name__ == "__main__":
    # small shapes consistent with the module
    B = 2
    num_hops = 3
    memory_size = 8
    max_ctx_len = 8
    max_sent_len = 8
    memory_dim = 32
    vocab_size = 32

    key = jax.random.PRNGKey(0)
    ks = jax.random.split(key, 16)

    def make_embedding(k, n, d):
        w = 0.1 * jax.random.normal(k, (n, d), dtype=jnp.float32)
        return w.at[PAD_ID].set(0.0)     # padding_idx=PAD_ID row zeroed

    # ADJACENT weight tying: A_0 (== B), A_{i+1} = C_i ; TA_{i+1} = TC_i.
    A0 = make_embedding(ks[0], vocab_size, memory_dim)
    C = [make_embedding(ks[1 + i], vocab_size, memory_dim) for i in range(num_hops)]
    TA0 = make_embedding(ks[1 + num_hops], max_ctx_len + 1, memory_dim)
    TC = [make_embedding(ks[2 + num_hops + i], max_ctx_len + 1, memory_dim)
          for i in range(num_hops)]
    TA = [TA0] + TC[:-1]
    B_weight = A0
    # TODO(synk): W (nn.Linear, tied to C[-1]) is only used in qa_forward, not forward.

    # inputs to forward()
    query = jax.random.randint(ks[10], (B, max_sent_len), 0, vocab_size)
    rel_time = jax.random.randint(ks[11], (B, memory_size), 0, max_ctx_len + 1)
    key_mems = jax.random.normal(ks[12], (B, num_hops, memory_size, memory_dim),
                                 jnp.float32)
    val_mems = jax.random.normal(ks[13], (B, num_hops, memory_size, memory_dim),
                                 jnp.float32)

    # glue: query embedding gather in plain JAX (tiny table, data-dependent indexing)
    q_emb = B_weight[query]                                               # [B,S,D]
    pos_enc = jnp.asarray(position_encoding(max_sent_len, memory_dim))    # [S,D]

    # Temporal tables, stacked per hop.  Snap them to bf16-representable values
    # (used identically by kernel and reference) so the in-kernel one-hot
    # matmul gather is bit-exact regardless of the MXU's f32 precision mode.
    def snap_bf16(x):
        return x.astype(jnp.bfloat16).astype(jnp.float32)

    ta_tab = snap_bf16(jnp.stack(TA, 0))                                  # [H,T+1,D]
    tc_tab = snap_bf16(jnp.stack(TC, 0))                                  # [H,T+1,D]

    out = base_forward_pallas(q_emb, pos_enc, rel_time, key_mems, val_mems,
                              ta_tab, tc_tab)
    jax.block_until_ready(out["u"])

    ref = reference_forward(q_emb, pos_enc, rel_time, key_mems, val_mems,
                            ta_tab, tc_tab)

    for name in ("u", "attns", "attn_avg", "attn_logit", "read_vector"):
        got = np.asarray(out[name])
        want = np.asarray(ref[name])
        assert got.shape == want.shape, (name, got.shape, want.shape)
        assert np.allclose(got, want, rtol=1e-3, atol=1e-3), (
            name, float(np.max(np.abs(got - want))))

    print("KERNEL_OK")
</pallas_src>

<mosaic_0001>
module attributes {stable_mosaic.version = 11 : i64} {
  func.func @_hop_loop_kernel(%arg0: i32, %arg1: memref<8x32xf32, #tpu.memory_space<vmem>>, %arg2: memref<64x16xf32, #tpu.memory_space<vmem>>, %arg3: memref<8x3x8x32xf32, #tpu.memory_space<vmem>>, %arg4: memref<8x3x8x32xf32, #tpu.memory_space<vmem>>, %arg5: memref<3x16x32xf32, #tpu.memory_space<vmem>>, %arg6: memref<3x16x32xf32, #tpu.memory_space<vmem>>, %arg7: memref<8x168xf32, #tpu.memory_space<vmem>>) attributes {dimension_semantics = [#tpu.dimension_semantics<parallel>], iteration_bounds = array<i64: 1>, scalar_prefetch = 0 : i64, scratch_operands = 0 : i64, tpu.core_type = #tpu.core_type<tc>, window_params = [{transform_indices = @transform_0, window_bounds = array<i64: 8, 32>}, {transform_indices = @transform_1, window_bounds = array<i64: 64, 16>}, {transform_indices = @transform_2, window_bounds = array<i64: 8, 3, 8, 32>}, {transform_indices = @transform_3, window_bounds = array<i64: 8, 3, 8, 32>}, {pipeline_mode = #tpu.pipeline_mode<synchronous>, transform_indices = @transform_4, window_bounds = array<i64: 3, 16, 32>}, {pipeline_mode = #tpu.pipeline_mode<synchronous>, transform_indices = @transform_5, window_bounds = array<i64: 3, 16, 32>}, {transform_indices = @transform_6, window_bounds = array<i64: 8, 168>}]} {
    %c0 = arith.constant 0 : index
    %c0_0 = arith.constant 0 : index
    %0 = vector.load %arg1[%c0, %c0_0] : memref<8x32xf32, #tpu.memory_space<vmem>>, vector<8x32xf32>
    %c0_1 = arith.constant 0 : index
    %c0_2 = arith.constant 0 : index
    %1 = vector.load %arg2[%c0_1, %c0_2] : memref<64x16xf32, #tpu.memory_space<vmem>>, vector<64x16xf32>
    %cst = arith.constant 0.000000e+00 : f32
    %2 = vector.broadcast %cst : f32 to vector<8x8xf32>
    %cst_3 = arith.constant 0.000000e+00 : f32
    %3 = vector.broadcast %cst_3 : f32 to vector<8x8xf32>
    %c0_4 = arith.constant 0 : index
    %c0_5 = arith.constant 0 : index
    %c0_6 = arith.constant 0 : index
    %4 = vector.load %arg5[%c0_4, %c0_5, %c0_6] : memref<3x16x32xf32, #tpu.memory_space<vmem>>, vector<1x16x32xf32>
    %5 = vector.shape_cast %4 : vector<1x16x32xf32> to vector<16x32xf32>
    %cst_7 = arith.constant dense<0.000000e+00> : vector<64x32xf32>
    %6 = tpu.matmul %1, %5, %cst_7 {dimension_numbers = #tpu.dot_dimension_numbers<[1], [0], [0], [1], [0, 0, 1, 1], [], []>} : vector<64x16xf32>, vector<16x32xf32>, vector<64x32xf32> -> vector<64x32xf32>
    %7 = vector.shape_cast %6 : vector<64x32xf32> to vector<8x8x32xf32>
    %c0_8 = arith.constant 0 : index
    %c0_9 = arith.constant 0 : index
    %c0_10 = arith.constant 0 : index
    %8 = vector.load %arg6[%c0_8, %c0_9, %c0_10] : memref<3x16x32xf32, #tpu.memory_space<vmem>>, vector<1x16x32xf32>
    %9 = vector.shape_cast %8 : vector<1x16x32xf32> to vector<16x32xf32>
    %cst_11 = arith.constant dense<0.000000e+00> : vector<64x32xf32>
    %10 = tpu.matmul %1, %9, %cst_11 {dimension_numbers = #tpu.dot_dimension_numbers<[1], [0], [0], [1], [0, 0, 1, 1], [], []>} : vector<64x16xf32>, vector<16x32xf32>, vector<64x32xf32> -> vector<64x32xf32>
    %11 = vector.shape_cast %10 : vector<64x32xf32> to vector<8x8x32xf32>
    %c0_12 = arith.constant 0 : index
    %c0_13 = arith.constant 0 : index
    %c0_14 = arith.constant 0 : index
    %c0_15 = arith.constant 0 : index
    %12 = vector.load %arg3[%c0_12, %c0_13, %c0_14, %c0_15] : memref<8x3x8x32xf32, #tpu.memory_space<vmem>>, vector<8x1x8x32xf32>
    %13 = vector.shape_cast %12 : vector<8x1x8x32xf32> to vector<8x8x32xf32>
    %14 = arith.addf %13, %7 : vector<8x8x32xf32>
    %c0_16 = arith.constant 0 : index
    %c0_17 = arith.constant 0 : index
    %c0_18 = arith.constant 0 : index
    %c0_19 = arith.constant 0 : index
    %15 = vector.load %arg4[%c0_16, %c0_17, %c0_18, %c0_19] : memref<8x3x8x32xf32, #tpu.memory_space<vmem>>, vector<8x1x8x32xf32>
    %16 = vector.shape_cast %15 : vector<8x1x8x32xf32> to vector<8x8x32xf32>
    %17 = arith.addf %16, %11 : vector<8x8x32xf32>
    %18 = vector.shape_cast %0 : vector<8x32xf32> to vector<8x1x32xf32>
    %19 = vector.broadcast %18 : vector<8x1x32xf32> to vector<8x8x32xf32>
    %20 = arith.mulf %14, %19 : vector<8x8x32xf32>
    %cst_20 = arith.constant dense<0.000000e+00> : vector<8x8xf32>
    %21 = vector.multi_reduction <add>, %20, %cst_20 [2] : vector<8x8x32xf32> to vector<8x8xf32>
    %22 = arith.addf %3, %21 : vector<8x8xf32>
    %cst_21 = arith.constant dense<0xFF800000> : vector<8xf32>
    %23 = vector.multi_reduction <maximumf>, %21, %cst_21 [1] : vector<8x8xf32> to vector<8xf32>
    %24 = vector.shape_cast %23 : vector<8xf32> to vector<8x1xf32>
    %25 = vector.broadcast %24 : vector<8x1xf32> to vector<8x8xf32>
    %26 = arith.subf %21, %25 : vector<8x8xf32>
    %27 = math.exp %26 : vector<8x8xf32>
    %cst_22 = arith.constant dense<0.000000e+00> : vector<8xf32>
    %28 = vector.multi_reduction <add>, %27, %cst_22 [1] : vector<8x8xf32> to vector<8xf32>
    %29 = vector.shape_cast %28 : vector<8xf32> to vector<8x1xf32>
    %30 = vector.broadcast %29 : vector<8x1xf32> to vector<8x8xf32>
    %31 = arith.divf %27, %30 : vector<8x8xf32>
    %32 = arith.addf %2, %31 : vector<8x8xf32>
    %33 = vector.shape_cast %31 : vector<8x8xf32> to vector<8x8x1xf32>
    %34 = vector.broadcast %33 : vector<8x8x1xf32> to vector<8x8x32xf32>
    %35 = arith.mulf %17, %34 : vector<8x8x32xf32>
    %cst_23 = arith.constant dense<0.000000e+00> : vector<8x32xf32>
    %36 = vector.multi_reduction <add>, %35, %cst_23 [1] : vector<8x8x32xf32> to vector<8x32xf32>
    %37 = arith.addf %36, %0 : vector<8x32xf32>
    %c1 = arith.constant 1 : index
    %c0_24 = arith.constant 0 : index
    %c0_25 = arith.constant 0 : index
    %38 = vector.load %arg5[%c1, %c0_24, %c0_25] : memref<3x16x32xf32, #tpu.memory_space<vmem>>, vector<1x16x32xf32>
    %39 = vector.shape_cast %38 : vector<1x16x32xf32> to vector<16x32xf32>
    %cst_26 = arith.constant dense<0.000000e+00> : vector<64x32xf32>
    %40 = tpu.matmul %1, %39, %cst_26 {dimension_numbers = #tpu.dot_dimension_numbers<[1], [0], [0], [1], [0, 0, 1, 1], [], []>} : vector<64x16xf32>, vector<16x32xf32>, vector<64x32xf32> -> vector<64x32xf32>
    %41 = vector.shape_cast %40 : vector<64x32xf32> to vector<8x8x32xf32>
    %c1_27 = arith.constant 1 : index
    %c0_28 = arith.constant 0 : index
    %c0_29 = arith.constant 0 : index
    %42 = vector.load %arg6[%c1_27, %c0_28, %c0_29] : memref<3x16x32xf32, #tpu.memory_space<vmem>>, vector<1x16x32xf32>
    %43 = vector.shape_cast %42 : vector<1x16x32xf32> to vector<16x32xf32>
    %cst_30 = arith.constant dense<0.000000e+00> : vector<64x32xf32>
    %44 = tpu.matmul %1, %43, %cst_30 {dimension_numbers = #tpu.dot_dimension_numbers<[1], [0], [0], [1], [0, 0, 1, 1], [], []>} : vector<64x16xf32>, vector<16x32xf32>, vector<64x32xf32> -> vector<64x32xf32>
    %45 = vector.shape_cast %44 : vector<64x32xf32> to vector<8x8x32xf32>
    %c0_31 = arith.constant 0 : index
    %c1_32 = arith.constant 1 : index
    %c0_33 = arith.constant 0 : index
    %c0_34 = arith.constant 0 : index
    %46 = vector.load %arg3[%c0_31, %c1_32, %c0_33, %c0_34] : memref<8x3x8x32xf32, #tpu.memory_space<vmem>>, vector<8x1x8x32xf32>
    %47 = vector.shape_cast %46 : vector<8x1x8x32xf32> to vector<8x8x32xf32>
    %48 = arith.addf %47, %41 : vector<8x8x32xf32>
    %c0_35 = arith.constant 0 : index
    %c1_36 = arith.constant 1 : index
    %c0_37 = arith.constant 0 : index
    %c0_38 = arith.constant 0 : index
    %49 = vector.load %arg4[%c0_35, %c1_36, %c0_37, %c0_38] : memref<8x3x8x32xf32, #tpu.memory_space<vmem>>, vector<8x1x8x32xf32>
    %50 = vector.shape_cast %49 : vector<8x1x8x32xf32> to vector<8x8x32xf32>
    %51 = arith.addf %50, %45 : vector<8x8x32xf32>
    %52 = vector.shape_cast %37 : vector<8x32xf32> to vector<8x1x32xf32>
    %53 = vector.broadcast %52 : vector<8x1x32xf32> to vector<8x8x32xf32>
    %54 = arith.mulf %48, %53 : vector<8x8x32xf32>
    %cst_39 = arith.constant dense<0.000000e+00> : vector<8x8xf32>
    %55 = vector.multi_reduction <add>, %54, %cst_39 [2] : vector<8x8x32xf32> to vector<8x8xf32>
    %56 = arith.addf %22, %55 : vector<8x8xf32>
    %cst_40 = arith.constant dense<0xFF800000> : vector<8xf32>
    %57 = vector.multi_reduction <maximumf>, %55, %cst_40 [1] : vector<8x8xf32> to vector<8xf32>
    %58 = vector.shape_cast %57 : vector<8xf32> to vector<8x1xf32>
    %59 = vector.broadcast %58 : vector<8x1xf32> to vector<8x8xf32>
    %60 = arith.subf %55, %59 : vector<8x8xf32>
    %61 = math.exp %60 : vector<8x8xf32>
    %cst_41 = arith.constant dense<0.000000e+00> : vector<8xf32>
    %62 = vector.multi_reduction <add>, %61, %cst_41 [1] : vector<8x8xf32> to vector<8xf32>
    %63 = vector.shape_cast %62 : vector<8xf32> to vector<8x1xf32>
    %64 = vector.broadcast %63 : vector<8x1xf32> to vector<8x8xf32>
    %65 = arith.divf %61, %64 : vector<8x8xf32>
    %66 = arith.addf %32, %65 : vector<8x8xf32>
    %67 = vector.shape_cast %65 : vector<8x8xf32> to vector<8x8x1xf32>
    %68 = vector.broadcast %67 : vector<8x8x1xf32> to vector<8x8x32xf32>
    %69 = arith.mulf %51, %68 : vector<8x8x32xf32>
    %cst_42 = arith.constant dense<0.000000e+00> : vector<8x32xf32>
    %70 = vector.multi_reduction <add>, %69, %cst_42 [1] : vector<8x8x32xf32> to vector<8x32xf32>
    %71 = arith.addf %70, %37 : vector<8x32xf32>
    %c2 = arith.constant 2 : index
    %c0_43 = arith.constant 0 : index
    %c0_44 = arith.constant 0 : index
    %72 = vector.load %arg5[%c2, %c0_43, %c0_44] : memref<3x16x32xf32, #tpu.memory_space<vmem>>, vector<1x16x32xf32>
    %73 = vector.shape_cast %72 : vector<1x16x32xf32> to vector<16x32xf32>
    %cst_45 = arith.constant dense<0.000000e+00> : vector<64x32xf32>
    %74 = tpu.matmul %1, %73, %cst_45 {dimension_numbers = #tpu.dot_dimension_numbers<[1], [0], [0], [1], [0, 0, 1, 1], [], []>} : vector<64x16xf32>, vector<16x32xf32>, vector<64x32xf32> -> vector<64x32xf32>
    %75 = vector.shape_cast %74 : vector<64x32xf32> to vector<8x8x32xf32>
    %c2_46 = arith.constant 2 : index
    %c0_47 = arith.constant 0 : index
    %c0_48 = arith.constant 0 : index
    %76 = vector.load %arg6[%c2_46, %c0_47, %c0_48] : memref<3x16x32xf32, #tpu.memory_space<vmem>>, vector<1x16x32xf32>
    %77 = vector.shape_cast %76 : vector<1x16x32xf32> to vector<16x32xf32>
    %cst_49 = arith.constant dense<0.000000e+00> : vector<64x32xf32>
    %78 = tpu.matmul %1, %77, %cst_49 {dimension_numbers = #tpu.dot_dimension_numbers<[1], [0], [0], [1], [0, 0, 1, 1], [], []>} : vector<64x16xf32>, vector<16x32xf32>, vector<64x32xf32> -> vector<64x32xf32>
    %79 = vector.shape_cast %78 : vector<64x32xf32> to vector<8x8x32xf32>
    %c0_50 = arith.constant 0 : index
    %c2_51 = arith.constant 2 : index
    %c0_52 = arith.constant 0 : index
    %c0_53 = arith.constant 0 : index
    %80 = vector.load %arg3[%c0_50, %c2_51, %c0_52, %c0_53] : memref<8x3x8x32xf32, #tpu.memory_space<vmem>>, vector<8x1x8x32xf32>
    %81 = vector.shape_cast %80 : vector<8x1x8x32xf32> to vector<8x8x32xf32>
    %82 = arith.addf %81, %75 : vector<8x8x32xf32>
    %c0_54 = arith.constant 0 : index
    %c2_55 = arith.constant 2 : index
    %c0_56 = arith.constant 0 : index
    %c0_57 = arith.constant 0 : index
    %83 = vector.load %arg4[%c0_54, %c2_55, %c0_56, %c0_57] : memref<8x3x8x32xf32, #tpu.memory_space<vmem>>, vector<8x1x8x32xf32>
    %84 = vector.shape_cast %83 : vector<8x1x8x32xf32> to vector<8x8x32xf32>
    %85 = arith.addf %84, %79 : vector<8x8x32xf32>
    %86 = vector.shape_cast %71 : vector<8x32xf32> to vector<8x1x32xf32>
    %87 = vector.broadcast %86 : vector<8x1x32xf32> to vector<8x8x32xf32>
    %88 = arith.mulf %82, %87 : vector<8x8x32xf32>
    %cst_58 = arith.constant dense<0.000000e+00> : vector<8x8xf32>
    %89 = vector.multi_reduction <add>, %88, %cst_58 [2] : vector<8x8x32xf32> to vector<8x8xf32>
    %90 = arith.addf %56, %89 : vector<8x8xf32>
    %cst_59 = arith.constant dense<0xFF800000> : vector<8xf32>
    %91 = vector.multi_reduction <maximumf>, %89, %cst_59 [1] : vector<8x8xf32> to vector<8xf32>
    %92 = vector.shape_cast %91 : vector<8xf32> to vector<8x1xf32>
    %93 = vector.broadcast %92 : vector<8x1xf32> to vector<8x8xf32>
    %94 = arith.subf %89, %93 : vector<8x8xf32>
    %95 = math.exp %94 : vector<8x8xf32>
    %cst_60 = arith.constant dense<0.000000e+00> : vector<8xf32>
    %96 = vector.multi_reduction <add>, %95, %cst_60 [1] : vector<8x8xf32> to vector<8xf32>
    %97 = vector.shape_cast %96 : vector<8xf32> to vector<8x1xf32>
    %98 = vector.broadcast %97 : vector<8x1xf32> to vector<8x8xf32>
    %99 = arith.divf %95, %98 : vector<8x8xf32>
    %100 = arith.addf %66, %99 : vector<8x8xf32>
    %101 = vector.shape_cast %99 : vector<8x8xf32> to vector<8x8x1xf32>
    %102 = vector.broadcast %101 : vector<8x8x1xf32> to vector<8x8x32xf32>
    %103 = arith.mulf %85, %102 : vector<8x8x32xf32>
    %cst_61 = arith.constant dense<0.000000e+00> : vector<8x32xf32>
    %104 = vector.multi_reduction <add>, %103, %cst_61 [1] : vector<8x8x32xf32> to vector<8x32xf32>
    %105 = arith.addf %104, %71 : vector<8x32xf32>
    %cst_62 = arith.constant 0.333333343 : f32
    %106 = vector.broadcast %cst_62 : f32 to vector<8x8xf32>
    %107 = arith.mulf %100, %106 : vector<8x8xf32>
    %cst_63 = arith.constant 0.333333343 : f32
    %108 = vector.broadcast %cst_63 : f32 to vector<8x8xf32>
    %109 = arith.mulf %90, %108 : vector<8x8xf32>
    %110 = tpu.concatenate %105, %31, %65, %99, %107, %109, %36, %70, %104 in 1 : vector<8x32xf32>, vector<8x8xf32>, vector<8x8xf32>, vector<8x8xf32>, vector<8x8xf32>, vector<8x8xf32>, vector<8x32xf32>, vector<8x32xf32>, vector<8x32xf32> -> vector<8x168xf32>
    %c0_64 = arith.constant 0 : index
    %c0_65 = arith.constant 0 : index
    %111 = vector.load %arg7[%c0_64, %c0_65] : memref<8x168xf32, #tpu.memory_space<vmem>>, vector<8x168xf32>
    tpu.vector_store %arg7[%c0_64, %c0_65], %110 {strides = array<i32>} : memref<8x168xf32, #tpu.memory_space<vmem>>, vector<8x168xf32>,
    return
  }
  func.func @transform_0(%arg0: i32) -> (i32, i32) {
    %c0_i32 = arith.constant 0 : i32
    %c0_i32_0 = arith.constant 0 : i32
    return %arg0, %c0_i32 : i32, i32
  }
  func.func @transform_1(%arg0: i32) -> (i32, i32) {
    %c0_i32 = arith.constant 0 : i32
    %c0_i32_0 = arith.constant 0 : i32
    return %arg0, %c0_i32 : i32, i32
  }
  func.func @transform_2(%arg0: i32) -> (i32, i32, i32, i32) {
    %c0_i32 = arith.constant 0 : i32
    %c0_i32_0 = arith.constant 0 : i32
    %c0_i32_1 = arith.constant 0 : i32
    %c0_i32_2 = arith.constant 0 : i32
    return %arg0, %c0_i32, %c0_i32_0, %c0_i32_1 : i32, i32, i32, i32
  }
  func.func @transform_3(%arg0: i32) -> (i32, i32, i32, i32) {
    %c0_i32 = arith.constant 0 : i32
    %c0_i32_0 = arith.constant 0 : i32
    %c0_i32_1 = arith.constant 0 : i32
    %c0_i32_2 = arith.constant 0 : i32
    return %arg0, %c0_i32, %c0_i32_0, %c0_i32_1 : i32, i32, i32, i32
  }
  func.func @transform_4(%arg0: i32) -> (i32, i32, i32) {
    %c0_i32 = arith.constant 0 : i32
    %c0_i32_0 = arith.constant 0 : i32
    %c0_i32_1 = arith.constant 0 : i32
    %c0_i32_2 = arith.constant 0 : i32
    return %c0_i32, %c0_i32_0, %c0_i32_1 : i32, i32, i32
  }
  func.func @transform_5(%arg0: i32) -> (i32, i32, i32) {
    %c0_i32 = arith.constant 0 : i32
    %c0_i32_0 = arith.constant 0 : i32
    %c0_i32_1 = arith.constant 0 : i32
    %c0_i32_2 = arith.constant 0 : i32
    return %c0_i32, %c0_i32_0, %c0_i32_1 : i32, i32, i32
  }
  func.func @transform_6(%arg0: i32) -> (i32, i32) {
    %c0_i32 = arith.constant 0 : i32
    %c0_i32_0 = arith.constant 0 : i32
    return %arg0, %c0_i32 : i32, i32
  }
}

</mosaic_0001>

<bundles_post_ra>
// kernel: tpu_custom_call.1
= control target key start
LH: loop header
LB: loop body
LE: loop exit
PB: predicated region body
PF: predicated region fallthrough
CT: control target
= control target key end

     0   :  { %11 = vsyncpa [#allocation3], 0  ;;  %s4242_s0 = inlined_call_operand.hbm [shape: f32[8,32], index: 0, kind: input, shape index: {}]   ;;  %s4243_s1 = inlined_call_operand.vmem [shape: f32[64,16], index: 1, kind: input, shape index: {}]   ;;  %s4244_s2 = inlined_call_operand.hbm [shape: f32[8,3,8,32], index: 2, kind: input, shape index: {}]   ;;  %s4245_s3 = inlined_call_operand.hbm [shape: f32[8,3,8,32], index: 3, kind: input, shape index: {}]   ;;  %s4246_s4 = inlined_call_operand.vmem [shape: f32[3,16,32], index: 4, kind: input, shape index: {}]   ;;  %s4247_s5 = inlined_call_operand.vmem [shape: f32[3,16,32], index: 5, kind: input, shape index: {}]   ;;  %s4248_s6 = inlined_call_operand.hbm [shape: f32[8,168], index: 6, kind: output, shape index: {}]  }
   0x1   :  { %12 = vsyncpa [#allocation6], 0 }
   0x2   :  { %13 = vsyncpa [#allocation4], 0  ;;  %s3064_s21 = smov [#allocation5]   ;;  %s2970_s25 = scalar_lea.hbm %s4244_s2, 3072 }
   0x3   :  { %s31_s22 = sshll.u32 %s3064_s21, 4  ;;  %p2971_p0 = scmp.ne.s32.totalorder %s4244_s2, %s2970_s25  ;;  %s32_s22 = int_to_ptr.vmem [resolvable:$true] %s31_s22 }
   0x4   :  { %p2974_p1 = scmp.lt.u32.totalorder %s2970_s25, %s4244_s2 }
   0x6   :  { %p2976_p2 = pnand %p2974_p1, %p2971_p0 }
   0x8   :  { %2979 = shalt.err (!%p2976_p2)
}
   0x9   :  { %s2980_s30 = scalar_lea.vmem %s32_s22, 3072  ;;  %p2985_p4 = scmp.lt.s32.totalorder %s32_s22, %s32_s22 }
   0xa   :  { %p2981_p3 = scmp.ne.s32.totalorder %s32_s22, %s2980_s30  ;;  %p2986_p5 = scmp.lt.s32.totalorder %s2980_s30, %s2980_s30 }
   0xc   :  { %p2987_p6 = por %p2986_p5, %p2985_p4 }
   0xe   :  { %p2988_p7 = pnand %p2987_p6, %p2981_p3 }
  0x10   :  { %2991 = shalt.err (!%p2988_p7)
}
  0x11   :  { %s3065_s7 = smov 128   ;;  %s3066_s8 = smov 8  }
  0x12   :  { %37 = dma.hbm_to_vmem [thread:$0]  %s4244_s2, 3072, %s32_s22, [#allocation6], %s3065_s7, %s3065_s7, %s3066_s8  }
  0x13   :  { %s3067_s11 = smov [#allocation2]   ;;  %s3068_s13 = smov [#allocation7]  }
  0x14   :  { %s20_s12 = sshll.u32 %s3067_s11, 4  ;;  %s43_s14 = sshll.u32 %s3068_s13, 4  ;;  %s21_s12 = int_to_ptr.vmem [resolvable:$true] %s20_s12  ;;  %s44_s14 = int_to_ptr.vmem [resolvable:$true] %s43_s14 }
  0x15   :  { %s2992_s17 = scalar_lea.hbm %s4242_s0, 128 }
  0x16   :  { %p2993_p8 = scmp.ne.s32.totalorder %s4242_s0, %s2992_s17  ;;  %p2996_p9 = scmp.lt.u32.totalorder %s2992_s17, %s4242_s0 }
  0x18   :  { %p2998_p10 = pnand %p2996_p9, %p2993_p8 }
  0x1a   :  { %3001 = shalt.err (!%p2998_p10)
}
  0x1b   :  { %s3002_s2 = scalar_lea.vmem %s21_s12, 128  ;;  %p3007_p12 = scmp.lt.s32.totalorder %s21_s12, %s21_s12 }
  0x1c   :  { %p3003_p11 = scmp.ne.s32.totalorder %s21_s12, %s3002_s2  ;;  %p3008_p13 = scmp.lt.s32.totalorder %s3002_s2, %s3002_s2 }
  0x1e   :  { %p3009_p0 = por %p3008_p13, %p3007_p12 }
  0x20   :  { %p3010_p1 = pnand %p3009_p0, %p3003_p11 }
  0x22   :  { %3013 = shalt.err (!%p3010_p1)
}
  0x23   :  { %23 = dma.hbm_to_vmem [thread:$0]  %s4242_s0, 128, %s21_s12, [#allocation3]  }
  0x24   :  { %s3014_s26 = scalar_lea.hbm %s4245_s3, 3072 }
  0x25   :  { %p3015_p2 = scmp.ne.s32.totalorder %s4245_s3, %s3014_s26  ;;  %p3018_p3 = scmp.lt.u32.totalorder %s3014_s26, %s4245_s3 }
  0x27   :  { %p3020_p4 = pnand %p3018_p3, %p3015_p2 }
  0x29   :  { %3023 = shalt.err (!%p3020_p4)
}
  0x2a   :  { %s3024_s9 = scalar_lea.vmem %s44_s14, 3072  ;;  %p3029_p6 = scmp.lt.s32.totalorder %s44_s14, %s44_s14 }
  0x2b   :  { %p3025_p5 = scmp.ne.s32.totalorder %s44_s14, %s3024_s9  ;;  %p3030_p7 = scmp.lt.s32.totalorder %s3024_s9, %s3024_s9 }
  0x2d   :  { %p3031_p8 = por %p3030_p7, %p3029_p6 }
  0x2f   :  { %p3032_p9 = pnand %p3031_p8, %p3025_p5 }
  0x31   :  { %3035 = shalt.err (!%p3032_p9)
}
  0x32   :  { %49 = dma.hbm_to_vmem [thread:$0]  %s4245_s3, 3072, %s44_s14, [#allocation6], %s3065_s7, %s3065_s7, %s3066_s8  }
  0x33   :  { %3058 = dma.done.wait [#allocation3], 128  }
  0x34   :  { %3059 = vsyncadd [#allocation3], 4294967168 }
  0x35   :  { %3060 = dma.done.wait [#allocation6], 6144  }
  0x36   :  { %3061 = vsyncadd [#allocation6], 4294961152  ;;  %vm74_vm0 = vcmask 130048   ;;  %v72_v0 = vld [vmem:[%s4246_s4] sm:$0xff]  ;;  %v73_v1 = vld [vmem:[%s4246_s4 + $0x8] sm:$0xff]  ;;  %v348_v13 = vlaneseq  ;;  %vm441_vm1 = vcmask 261120  }
  0x37   :  { %v3160_v2 = vld [vmem:[%s4243_s1] sm:$0xff]  ;;  %v2829_v3 = vpack.c.bf16 %v73_v1, %v72_v0  ;;  %v3169_v4 = vld [vmem:[%s4243_s1 + $0x8] sm:$0xff]  ;;  %v3174_v5 = vld [vmem:[%s4243_s1 + $0x10] sm:$0xff]  ;;  %v3069_v11 = vmov 1966171168   ;;  %vm516_vm2 = vcmask 1041409  }
  0x38   :  { %2737 = vmatprep.mubr.msk.f32.mxu0 %vm74_vm0, %v3160_v2  ;;  %2753 = vmatprep.mubr.msk.f32.mxu1 %vm74_vm0, %v3160_v2  ;;  %v3183_v6 = vld [vmem:[%s4243_s1 + $0x18] sm:$0xff]  ;;  %v3188_v7 = vld [vmem:[%s4243_s1 + $0x20] sm:$0xff]  ;;  %v3197_v8 = vld [vmem:[%s4243_s1 + $0x28] sm:$0xff]  ;;  %v346_v12 = vunpack.c.l.s4 %v3069_v11  ;;  %v3218_v15 = vshrl.u32 %v348_v13, 7  ;;  %vm518_vm3 = vcmask 1042434   ;;  %vm520_vm4 = vcmask 1043459  }
  0x39   :  { %2830 = vmatprep.subr.bf16.mxu0 %v2829_v3  ;;  %v3202_v9 = vld [vmem:[%s4243_s1 + $0x30] sm:$0xff]  ;;  %v3211_v10 = vld [vmem:[%s4243_s1 + $0x38] sm:$0xff]  ;;  %v3221_v17 = vld [vmem:[#allocation2] sm:$0xff]  ;;  %vm522_vm5 = vcmask 1044484   ;;  %vm524_vm6 = vcmask 1045509   ;;  %vm526_vm7 = vcmask 1046534  }
  0x3a   :  { %2832 = vmatpush3.bf16.msra.mxu0 %v2829_v3  ;;  %v347_v14 = vunpack.c.0.s8 %v346_v12  ;;  %4287 = vst [vmem:[#allocation12_spill] sm:$0xff] %v3218_v15  ;;  %v344_v20 = vcombine.high %v3221_v17, %v3221_v17  ;;  %v3227_v22 = vsub.s32 0, %v3218_v15  ;;  %v312_v25 = vld [vmem:[#allocation5 + $0x18] sm:$0xff]  ;;  %v311_v26 = vld [vmem:[#allocation5] sm:$0xff]  ;;  %v314_v36 = vld [vmem:[#allocation5 + $0x48] sm:$0xff]  ;;  %vm528_vm8 = vcmask 1047559  }
  0x3b   :  { %v313_v37 = vld [vmem:[#allocation5 + $0x30] sm:$0xff]  ;;  %v316_v49 = vld [vmem:[#allocation5 + $0x78] sm:$0xff]  ;;  %v315_v50 = vld [vmem:[#allocation5 + $0x60] sm:$0xff]  ;;  %vm531_vm9 = vcmask 64512   ;;  %s3072_s13 = smov 104   ;;  %vm2586_vm10 = vcmask 326656  }
  0x3c   :  { %v350_v16 = vsub.s32 %v347_v14, %v3218_v15  ;;  %v318_v63 = vld [vmem:[#allocation5 + $0xa8] sm:$0xff]  ;;  %v317_v0 = vld [vmem:[#allocation5 + $0x90] sm:$0xff]  ;;  %vm2588_vm11 = vcmask 392192   ;;  %vm2590_vm12 = vcmask 457728   ;;  %vm2592_vm13 = vcmask 523264  }
  0x3d   :  { %2738 = vmatmul.mubr.msk.f32.vlgmr.msra.gmra.mrb[0].mxu0 %vm74_vm0, %v3169_v4  ;;  %vm2594_vm14 = vcmask 588800   ;;  %vm2596_vm15 = vcmask 850944  }
  0x3e   :  { %2740 = vmatprep.mubr.msk.f32.mxu0 %vm74_vm0, %v3174_v5  ;;  %v351_v18 = vrot.slane %v3221_v17, %v350_v16  ;;  %v358_v23 = vrot.slane %v344_v20, %v350_v16 }
  0x40   :  { %v359_v19 = vcombine.high %v351_v18, %v351_v18  ;;  %v367_v24 = vrot.slane %v351_v18, %v350_v16  ;;  %v360_v30 = vcombine.high %v358_v23, %v358_v23  ;;  %v374_v41 = vrot.slane %v358_v23, %v350_v16 }
  0x41   :  { %2741 = vmatmul.mubr.msk.f32.gmra.mrb[2].mxu0 %vm74_vm0, %v3183_v6 }
  0x42   :  { %2743 = vmatprep.mubr.msk.f32.mxu0 %vm74_vm0, %v3188_v7  ;;  %v381_v21 = vrot.slane %v359_v19, %v350_v16  ;;  %v396_v33 = vrot.slane %v367_v24, %v3227_v22  ;;  %v389_v34 = vcombine.high %v367_v24, %v367_v24  ;;  %v388_v42 = vrot.slane %v360_v30, %v350_v16 }
  0x43   :  { %v412_v53 = vrot.slane %v374_v41, %v3227_v22  ;;  %v390_v55 = vcombine.high %v374_v41, %v374_v41 }
  0x44   :  { %v400_v27 = vrot.slane %v381_v21, %v3227_v22  ;;  %v391_v28 = vcombine.high %v381_v21, %v381_v21  ;;  %v404_v47 = vrot.slane %v389_v34, %v3227_v22  ;;  %v416_v54 = vrot.slane %v388_v42, %v3227_v22 }
  0x45   :  { %2744 = vmatmul.mubr.msk.f32.gmra.mrb[4].mxu0 %vm74_vm0, %v3197_v8  ;;  %v392_v56 = vcombine.high %v388_v42, %v388_v42  ;;  %v420_v11 = vrot.slane %v390_v55, %v3227_v22  ;;  %v3296_v55 = vsub.s32 2, %v3218_v15 }
  0x46   :  { %2746 = vmatprep.mubr.msk.f32.mxu0 %vm74_vm0, %v3202_v9  ;;  %v408_v39 = vrot.slane %v391_v28, %v3227_v22  ;;  %v3246_v28 = vand.u32 127, %v348_v13 }
  0x47   :  { %v424_v19 = vrot.slane %v392_v56, %v3227_v22  ;;  %v3299_v56 = vsub.s32 3, %v3218_v15 }
  0x48   :  { %4288 = vst [vmem:[#allocation13_spill] sm:$0xff] %v3246_v28  ;;  %v3252_v30 = vsub.s32 %v3246_v28, %v3218_v15 }
  0x49   :  { %2747 = vmatmul.mubr.msk.f32.gmra.mrb[6].mxu0 %vm74_vm0, %v3211_v10 }
  0x4a   :  { %2769 = vmatprep.mubr.msk.f32.mxu0 %vm74_vm0, %v3160_v2 }
 0x110   :  { %v2739_v29 = vpop.f32.mrb[0].mxu0 }
 0x111   :  { %v320_v31 = vadd.f32 %v2739_v29, %v312_v25  ;;  %v165_v32 = vpop.f32.mrb[1].mxu0 }
 0x112   :  { %v319_v35 = vadd.f32 %v311_v26, %v165_v32 }
 0x113   :  { %v434_v38 = vmul.f32 %v400_v27, %v320_v31 }
 0x114   :  { %v2742_v40 = vpop.f32.mrb[2].mxu0  ;;  %v433_v46 = vmul.f32 %v396_v33, %v319_v35 }
 0x115   :  { %v322_v43 = vadd.f32 %v2742_v40, %v314_v36  ;;  %v175_v44 = vpop.f32.mrb[3].mxu0  ;;  %v445_v45 = vsel %vm441_vm1, %v434_v38, 0.0 }
 0x116   :  { %v321_v48 = vadd.f32 %v313_v37, %v175_v44  ;;  %446 = vadd.xlane.f32.xlu0 %v445_v45  ;;  %v442_v59 = vsel %vm441_vm1, %v433_v46, 0.0 }
 0x117   :  { %v436_v51 = vmul.f32 %v408_v39, %v322_v43 }
 0x118   :  { %v2745_v52 = vpop.f32.mrb[4].mxu0  ;;  %v435_v61 = vmul.f32 %v404_v47, %v321_v48 }
 0x119   :  { %v324_v57 = vadd.f32 %v2745_v52, %v316_v49  ;;  %v185_v58 = vpop.f32.mrb[5].mxu0  ;;  %v451_v60 = vsel %vm441_vm1, %v436_v51, 0.0 }
 0x11a   :  { %v323_v62 = vadd.f32 %v315_v50, %v185_v58  ;;  %443 = vadd.xlane.f32.xlu0 %v442_v59  ;;  %452 = vadd.xlane.f32.xlu1 %v451_v60  ;;  %v448_v16 = vsel %vm441_vm1, %v435_v61, 0.0  ;;  %v3305_v61 = vsub.s32 4, %v3218_v15 }
 0x11b   :  { %v438_v18 = vmul.f32 %v416_v54, %v324_v57  ;;  %v3293_v54 = vsub.s32 1, %v3218_v15 }
 0x11c   :  { %v2748_v1 = vpop.f32.mrb[6].mxu0  ;;  %v437_v3 = vmul.f32 %v412_v53, %v323_v62  ;;  %v3070_v53 = vmov 0  }
 0x11d   :  { %v326_v12 = vadd.f32 %v2748_v1, %v318_v63  ;;  %v195_v14 = vpop.f32.mrb[7].mxu0  ;;  %v457_v24 = vsel %vm441_vm1, %v438_v18, 0.0  ;;  %2864 = vset.pattern.permute.xlu0 %v3070_v53  ;;  %2863 = vset.pattern.permute.xlu1 %v3070_v53  ;;  %v2633_v53 = vld [vmem:[%s4246_s4 + $0x10] sm:$0xff] }
 0x11e   :  { %v325_v20 = vadd.f32 %v317_v0, %v195_v14  ;;  %449 = vadd.xlane.f32.xlu1 %v448_v16  ;;  %v454_v21 = vsel %vm441_vm1, %v437_v3, 0.0 }
 0x11f   :  { %455 = vadd.xlane.f32.xlu0 %v454_v21  ;;  %v440_v25 = vmul.f32 %v424_v19, %v326_v12  ;;  %v3312_v12 = vsub.s32 5, %v3218_v15  ;;  %v3317_v19 = vsub.s32 6, %v3218_v15 }
 0x120   :  { %v439_v23 = vmul.f32 %v420_v11, %v325_v20 }
 0x121   :  { %v463_v27 = vsel %vm441_vm1, %v440_v25, 0.0 }
 0x122   :  { %458 = vadd.xlane.f32.xlu1 %v457_v24  ;;  %v460_v26 = vsel %vm441_vm1, %v439_v23, 0.0  ;;  %v3322_v24 = vsub.s32 7, %v3218_v15 }
 0x123   :  { %461 = vadd.xlane.f32.xlu0 %v460_v26 }
 0x126   :  { %464 = vadd.xlane.f32.xlu1 %v463_v27 }
 0x1a3   :  { %v3248_v29 = vpop.xlane.xlu0 %446 }
 0x1a4   :  { %4289 = vst [vmem:[#allocation14_spill] sm:$0xff] %v3248_v29  ;;  %v491_v34 = vrot.slane %v3248_v29, %v3252_v30 }
 0x1a7   :  { %v3254_v31 = vpop.xlane.xlu0 %443  ;;  %v3256_v32 = vpop.xlane.xlu1 %452 }
 0x1a8   :  { %4290 = vst [vmem:[#allocation15_spill] sm:$0xff] %v3254_v31  ;;  %4291 = vst [vmem:[#allocation16_spill] sm:$0xff] %v3256_v32  ;;  %v487_v33 = vrot.slane %v3254_v31, %v3252_v30  ;;  %v499_v38 = vrot.slane %v3256_v32, %v3252_v30 }
 0x1aa   :  { %v517_v37 = vsel %vm516_vm2, %v491_v34, %v487_v33 }
 0x1ab   :  { %v3262_v13 = vpop.xlane.xlu1 %449 }
 0x1ac   :  { %4292 = vst [vmem:[#allocation17_spill] sm:$0xff] %v3262_v13  ;;  %v495_v35 = vrot.slane %v3262_v13, %v3252_v30  ;;  %v3266_v36 = vpop.xlane.xlu0 %455 }
 0x1ad   :  { %4293 = vst [vmem:[#allocation18_spill] sm:$0xff] %v3266_v36  ;;  %v503_v39 = vrot.slane %v3266_v36, %v3252_v30 }
 0x1ae   :  { %v519_v40 = vsel %vm518_vm3, %v495_v35, %v517_v37 }
 0x1af   :  { %v521_v41 = vsel %vm520_vm4, %v499_v38, %v519_v40  ;;  %v3275_v42 = vpop.xlane.xlu1 %458 }
 0x1b0   :  { %4294 = vst [vmem:[#allocation19_spill] sm:$0xff] %v3275_v42  ;;  %v523_v43 = vsel %vm522_vm5, %v503_v39, %v521_v41  ;;  %v507_v44 = vrot.slane %v3275_v42, %v3252_v30  ;;  %v3280_v45 = vpop.xlane.xlu0 %461 }
 0x1b1   :  { %4295 = vst [vmem:[#allocation20_spill] sm:$0xff] %v3280_v45  ;;  %v511_v46 = vrot.slane %v3280_v45, %v3252_v30 }
 0x1b2   :  { %v525_v47 = vsel %vm524_vm6, %v507_v44, %v523_v43 }
 0x1b3   :  { %v3285_v48 = vpop.xlane.xlu1 %464  ;;  %v527_v50 = vsel %vm526_vm7, %v511_v46, %v525_v47 }
 0x1b4   :  { %4296 = vst [vmem:[#allocation21_spill] sm:$0xff] %v3285_v48  ;;  %v515_v49 = vrot.slane %v3285_v48, %v3252_v30 }
 0x1b6   :  { %v529_v51 = vsel %vm528_vm8, %v515_v49, %v527_v50 }
 0x1b7   :  { %v532_v52 = vsel %vm531_vm9, %v529_v51, -inf  ;;  %v204_v51 = vld [vmem:[%s4247_s5] sm:$0xff] }
 0x1b8   :  { %533 = vmax.xlane.f32.xlu0 %v532_v52  ;;  %v205_v52 = vld [vmem:[%s4247_s5 + $0x8] sm:$0xff] }
 0x245   :  { %v534_v57 = vpop.xlane.xlu0 %533 }
 0x246   :  { %v539_v58 = vrot.slane %v534_v57, %v3227_v22  ;;  %v543_v59 = vrot.slane %v534_v57, %v3293_v54  ;;  %v547_v60 = vrot.slane %v534_v57, %v3296_v55  ;;  %v551_v62 = vrot.slane %v534_v57, %v3299_v56 }
 0x247   :  { %v555_v14 = vrot.slane %v534_v57, %v3305_v61  ;;  %v559_v20 = vrot.slane %v534_v57, %v3312_v12  ;;  %v563_v25 = vrot.slane %v534_v57, %v3317_v19  ;;  %v567_v35 = vrot.slane %v534_v57, %v3322_v24 }
 0x248   :  { %v576_v63 = vsub.f32 %v3254_v31, %v539_v58  ;;  %v577_v0 = vsub.f32 %v3248_v29, %v543_v59  ;;  %v578_v1 = vsub.f32 %v3262_v13, %v547_v60  ;;  %v579_v16 = vsub.f32 %v3256_v32, %v551_v62  ;;  %v2634_v58 = vld [vmem:[%s4246_s4 + $0x18] sm:$0xff] }
 0x249   :  { %v580_v21 = vsub.f32 %v3266_v36, %v555_v14  ;;  %v581_v26 = vsub.f32 %v3275_v42, %v559_v20  ;;  %v582_v37 = vsub.f32 %v3280_v45, %v563_v25  ;;  %v583_v40 = vsub.f32 %v3285_v48, %v567_v35  ;;  %v332_v48 = vld [vmem:[#allocation7 + $0x78] sm:$0xff] }
 0x24a   :  { %v584_v3 = vmul.f32 1.442695, %v576_v63  ;;  %v586_v11 = vmul.f32 1.442695, %v577_v0  ;;  %v588_v18 = vmul.f32 1.442695, %v578_v1  ;;  %v2833_v57 = vpack.c.bf16 %v205_v52, %v204_v51 }
 0x24b   :  { %v590_v23 = vmul.f32 1.442695, %v579_v16  ;;  %v592_v27 = vmul.f32 1.442695, %v580_v21  ;;  %v594_v38 = vmul.f32 1.442695, %v581_v26  ;;  %v2837_v59 = vpack.c.bf16 %v2634_v58, %v2633_v53 }
 0x24c   :  { %2866 = vpow2.f32 %v584_v3  ;;  %v596_v41 = vmul.f32 1.442695, %v582_v37  ;;  %v598_v44 = vmul.f32 1.442695, %v583_v40  ;;  %2834 = vmatprep.subr.bf16.mxu1 %v2833_v57  ;;  %v844_v36 = vrot.slane %v3221_v17, 1 }
 0x24d   :  { %2868 = vpow2.f32 %v586_v11  ;;  %2836 = vmatpush3.bf16.msra.mxu1 %v2833_v57  ;;  %2838 = vmatprep.subr.bf16.mxu0 %v2837_v59 }
 0x24e   :  { %2870 = vpow2.f32 %v588_v18  ;;  %2840 = vmatpush3.bf16.msra.mxu0 %v2837_v59 }
 0x24f   :  { %2872 = vpow2.f32 %v590_v23 }
 0x250   :  { %2874 = vpow2.f32 %v592_v27  ;;  %2754 = vmatmul.mubr.msk.f32.vlgmr.msra.gmra.mrb[0].mxu1 %vm74_vm0, %v3169_v4 }
 0x251   :  { %2876 = vpow2.f32 %v594_v38  ;;  %2756 = vmatprep.mubr.msk.f32.mxu1 %vm74_vm0, %v3174_v5  ;;  %2770 = vmatmul.mubr.msk.f32.vlgmr.msra.gmra.mrb[8].mxu0 %vm74_vm0, %v3169_v4 }
 0x252   :  { %2878 = vpow2.f32 %v596_v41  ;;  %2772 = vmatprep.mubr.msk.f32.mxu0 %vm74_vm0, %v3174_v5 }
 0x253   :  { %2880 = vpow2.f32 %v598_v44 }
 0x254   :  { %2757 = vmatmul.mubr.msk.f32.gmra.mrb[2].mxu1 %vm74_vm0, %v3183_v6 }
 0x255   :  { %2759 = vmatprep.mubr.msk.f32.mxu1 %vm74_vm0, %v3188_v7  ;;  %2773 = vmatmul.mubr.msk.f32.gmra.mrb[10].mxu0 %vm74_vm0, %v3183_v6 }
 0x256   :  { %v3326_v33 = vpop.eup %2866  ;;  %2775 = vmatprep.mubr.msk.f32.mxu0 %vm74_vm0, %v3188_v7 }
 0x257   :  { %v3328_v34 = vpop.eup %2868  ;;  %609 = vperm.xlu1 %2863, %v3326_v33  }
 0x258   :  { %612 = vperm.xlu0 %2864, %v3328_v34   ;;  %v3334_v39 = vpop.eup %2870  ;;  %2760 = vmatmul.mubr.msk.f32.gmra.mrb[4].mxu1 %vm74_vm0, %v3197_v8 }
 0x259   :  { %v3338_v43 = vpop.eup %2872  ;;  %2762 = vmatprep.mubr.msk.f32.mxu1 %vm74_vm0, %v3202_v9  ;;  %2776 = vmatmul.mubr.msk.f32.gmra.mrb[12].mxu0 %vm74_vm0, %v3197_v8 }
 0x25a   :  { %v3341_v46 = vpop.eup %2874  ;;  %2778 = vmatprep.mubr.msk.f32.mxu0 %vm74_vm0, %v3202_v9 }
 0x25b   :  { %615 = vperm.xlu1 %2863, %v3334_v39   ;;  %v3344_v47 = vpop.eup %2876 }
 0x25c   :  { %v3347_v49 = vpop.eup %2878  ;;  %2763 = vmatmul.mubr.msk.f32.gmra.mrb[6].mxu1 %vm74_vm0, %v3211_v10 }
 0x25d   :  { %v3350_v50 = vpop.eup %2880  ;;  %2779 = vmatmul.mubr.msk.f32.gmra.mrb[14].mxu0 %vm74_vm0, %v3211_v10  ;;  %2785 = vmatprep.mubr.msk.f32.mxu1 %vm74_vm0, %v3160_v2 }
 0x25e   :  { %2801 = vmatprep.mubr.msk.f32.mxu0 %vm74_vm0, %v3160_v2 }
 0x25f   :  { %618 = vperm.xlu1 %2863, %v3338_v43  }
 0x263   :  { %621 = vperm.xlu1 %2863, %v3341_v46  }
 0x267   :  { %624 = vperm.xlu1 %2863, %v3344_v47  }
 0x26b   :  { %627 = vperm.xlu1 %2863, %v3347_v49  }
 0x26f   :  { %630 = vperm.xlu1 %2863, %v3350_v50  }
 0x2d6   :  { %v610_v4 = vpop.permute.xlu1 %609 }
 0x2d7   :  { %v613_v8 = vpop.permute.xlu0 %612  ;;  %v635_v62 = vrot.slane %v610_v4, %v3252_v30 }
 0x2d8   :  { %v639_v9 = vrot.slane %v613_v8, %v3252_v30 }
 0x2da   :  { %v616_v5 = vpop.permute.xlu1 %615  ;;  %v664_v3 = vsel %vm516_vm2, %v639_v9, %v635_v62 }
 0x2db   :  { %v643_v63 = vrot.slane %v616_v5, %v3252_v30 }
 0x2dd   :  { %v665_v11 = vsel %vm518_vm3, %v643_v63, %v664_v3 }
 0x2de   :  { %v619_v6 = vpop.permute.xlu1 %618 }
 0x2df   :  { %v647_v10 = vrot.slane %v619_v6, %v3252_v30 }
 0x2e1   :  { %v666_v16 = vsel %vm520_vm4, %v647_v10, %v665_v11 }
 0x2e2   :  { %v622_v7 = vpop.permute.xlu1 %621 }
 0x2e3   :  { %v651_v0 = vrot.slane %v622_v7, %v3252_v30 }
 0x2e5   :  { %v667_v18 = vsel %vm522_vm5, %v651_v0, %v666_v16 }
 0x2e6   :  { %v625_v60 = vpop.permute.xlu1 %624 }
 0x2e7   :  { %v655_v2 = vrot.slane %v625_v60, %v3252_v30 }
 0x2e9   :  { %v668_v21 = vsel %vm524_vm6, %v655_v2, %v667_v18 }
 0x2ea   :  { %v628_v1 = vpop.permute.xlu1 %627 }
 0x2eb   :  { %v659_v14 = vrot.slane %v628_v1, %v3252_v30 }
 0x2ed   :  { %v669_v25 = vsel %vm526_vm7, %v659_v14, %v668_v21 }
 0x2ee   :  { %v631_v20 = vpop.permute.xlu1 %630 }
 0x2ef   :  { %v663_v23 = vrot.slane %v631_v20, %v3252_v30 }
 0x2f1   :  { %v670_v26 = vsel %vm528_vm8, %v663_v23, %v669_v25 }
 0x2f2   :  { %v672_v27 = vsel %vm531_vm9, %v670_v26, 0.0 }
 0x2f3   :  { %673 = vadd.xlane.f32.xlu1 %v672_v27  ;;  %v2286_v27 = vadd.s32 4294967264, %v3246_v28 }
 0x323   :  { %v2755_v35 = vpop.f32.mrb[0].mxu1 }
 0x324   :  { %v272_v37 = vpop.f32.mrb[1].mxu1  ;;  %v2771_v2 = vpop.f32.mrb[8].mxu0 }
 0x325   :  { %v3448_v14 = vpop.f32.mrb[9].mxu0 }
 0x328   :  { %v3459_v18 = vpop.f32.mrb[10].mxu0 }
 0x329   :  { %v3461_v20 = vpop.f32.mrb[11].mxu0 }
 0x380   :  { %v674_v38 = vpop.xlane.xlu1 %673 }
 0x381   :  { %v679_v40 = vrot.slane %v674_v38, %v3227_v22  ;;  %v683_v41 = vrot.slane %v674_v38, %v3293_v54  ;;  %v687_v44 = vrot.slane %v674_v38, %v3296_v55  ;;  %v691_v51 = vrot.slane %v674_v38, %v3299_v56 }
 0x382   :  { %v695_v53 = vrot.slane %v674_v38, %v3305_v61  ;;  %v699_v59 = vrot.slane %v674_v38, %v3312_v12  ;;  %v703_v6 = vrot.slane %v674_v38, %v3317_v19  ;;  %v707_v8 = vrot.slane %v674_v38, %v3322_v24  ;;  %v328_v38 = vld [vmem:[#allocation7 + $0x18] sm:$0xff] }
 0x383   :  { %2882 = vrcp.f32 %v679_v40 }
 0x384   :  { %2884 = vrcp.f32 %v683_v41  ;;  %v336_v41 = vadd.f32 %v2755_v35, %v328_v38 }
 0x385   :  { %2886 = vrcp.f32 %v687_v44  ;;  %v3473_v44 = vsub.s32 %v2286_v27, %v3218_v15 }
 0x386   :  { %2888 = vrcp.f32 %v691_v51 }
 0x387   :  { %2890 = vrcp.f32 %v695_v53  ;;  %4305 = vst [vmem:[#allocation30_spill] sm:$0xff] %v3473_v44 }
 0x388   :  { %2892 = vrcp.f32 %v699_v59 }
 0x389   :  { %2894 = vrcp.f32 %v703_v6 }
 0x38a   :  { %2896 = vrcp.f32 %v707_v8 }
 0x38d   :  { %v2883_v52 = vpop.eup %2882 }
 0x38e   :  { %v3419_v57 = vmul.f32 %v2883_v52, %v3326_v33  ;;  %v2885_v58 = vpop.eup %2884  ;;  %v329_v52 = vld [vmem:[#allocation7 + $0x30] sm:$0xff] }
 0x38f   :  { %v3424_v4 = vmul.f32 %v2885_v58, %v3328_v34  ;;  %v2887_v5 = vpop.eup %2886  ;;  %v2758_v34 = vpop.f32.mrb[2].mxu1 }
 0x390   :  { %4297 = vst [vmem:[#allocation22_spill] sm:$0xff] %v3419_v57  ;;  %742 = vperm.xlu0 %2864, %v3419_v57   ;;  %v3429_v7 = vmul.f32 %v2887_v5, %v3334_v39  ;;  %v2889_v33 = vpop.eup %2888  ;;  %v282_v62 = vpop.f32.mrb[3].mxu1  ;;  %v1107_v57 = vld [vmem:[#allocation7 + $0x98] sm:$0xff] }
 0x391   :  { %4298 = vst [vmem:[#allocation23_spill] sm:$0xff] %v3424_v4  ;;  %v3434_v60 = vmul.f32 %v2889_v33, %v3338_v43  ;;  %v2891_v9 = vpop.eup %2890  ;;  %v2761_v0 = vpop.f32.mrb[4].mxu1 }
 0x392   :  { %4299 = vst [vmem:[#allocation24_spill] sm:$0xff] %v3429_v7  ;;  %v3438_v63 = vmul.f32 %v2891_v9, %v3341_v46  ;;  %v2893_v39 = vpop.eup %2892  ;;  %v292_v3 = vpop.f32.mrb[5].mxu1  ;;  %v340_v45 = vadd.f32 %v2761_v0, %v332_v48 }
 0x393   :  { %4300 = vst [vmem:[#allocation25_spill] sm:$0xff] %v3434_v60  ;;  %v3442_v10 = vmul.f32 %v2893_v39, %v3344_v47  ;;  %v2895_v1 = vpop.eup %2894  ;;  %v3454_v16 = vpop.f32.mrb[6].mxu1 }
 0x394   :  { %747 = vperm.xlu0 %2864, %v3424_v4   ;;  %4301 = vst [vmem:[#allocation26_spill] sm:$0xff] %v3438_v63  ;;  %v3446_v43 = vmul.f32 %v2895_v1, %v3347_v49  ;;  %v2897_v11 = vpop.eup %2896  ;;  %v3456_v47 = vpop.f32.mrb[7].mxu1  ;;  %v330_v1 = vld [vmem:[#allocation7 + $0x48] sm:$0xff] }
 0x395   :  { %4302 = vst [vmem:[#allocation27_spill] sm:$0xff] %v3442_v10  ;;  %v3452_v46 = vmul.f32 %v2897_v11, %v3350_v50  ;;  %v3463_v49 = vpop.f32.mrb[12].mxu0  ;;  %v327_v50 = vld [vmem:[#allocation7] sm:$0xff] }
 0x396   :  { %4303 = vst [vmem:[#allocation28_spill] sm:$0xff] %v3446_v43  ;;  %v3465_v21 = vpop.f32.mrb[13].mxu0  ;;  %v335_v26 = vadd.f32 %v327_v50, %v272_v37  ;;  %v337_v37 = vadd.f32 %v329_v52, %v282_v62  ;;  %v1085_v52 = vld [vmem:[#allocation5 + $0x20] sm:$0xff] }
 0x397   :  { %4304 = vst [vmem:[#allocation29_spill] sm:$0xff] %v3452_v46  ;;  %v3467_v23 = vpop.f32.mrb[14].mxu0 }
 0x398   :  { %752 = vperm.xlu0 %2864, %v3429_v7   ;;  %v3469_v25 = vpop.f32.mrb[15].mxu0 }
 0x39c   :  { %757 = vperm.xlu0 %2864, %v3434_v60  }
 0x3a0   :  { %762 = vperm.xlu0 %2864, %v3438_v63  }
 0x3a4   :  { %767 = vperm.xlu0 %2864, %v3442_v10   ;;  %v1103_v10 = vld [vmem:[#allocation7 + $0x38] sm:$0xff] }
 0x3a8   :  { %772 = vperm.xlu0 %2864, %v3446_v43  }
 0x3ac   :  { %777 = vperm.xlu0 %2864, %v3452_v46  }
 0x40f   :  { %v743_v40 = vpop.permute.xlu0 %742 }
 0x410   :  { %v780_v51 = vmul.f32 %v743_v40, %v335_v26  ;;  %v2290_v5 = vrot.slane %v743_v40, %v3473_v44  ;;  %v331_v40 = vld [vmem:[#allocation7 + $0x60] sm:$0xff] }
 0x412   :  { %v788_v53 = vsel %vm441_vm1, %v780_v51, 0.0 }
 0x413   :  { %v789_v58 = vrot.slane %v788_v53, 4  ;;  %v748_v59 = vpop.permute.xlu0 %747 }
 0x414   :  { %v781_v6 = vmul.f32 %v748_v59, %v336_v41  ;;  %v2294_v33 = vrot.slane %v748_v59, %v3473_v44  ;;  %v338_v41 = vadd.f32 %v2758_v34, %v330_v1  ;;  %v333_v34 = vld [vmem:[#allocation7 + $0x90] sm:$0xff] }
 0x415   :  { %v790_v8 = vadd.f32 %v789_v58, %v788_v53 }
 0x416   :  { %v795_v9 = vsel %vm441_vm1, %v781_v6, 0.0  ;;  %v2319_v35 = vsel %vm516_vm2, %v2294_v33, %v2290_v5  ;;  %v1084_v33 = vld [vmem:[#allocation5 + $0x8] sm:$0xff] }
 0x417   :  { %v791_v39 = vrot.slane %v790_v8, 2  ;;  %v796_v11 = vrot.slane %v795_v9, 4  ;;  %v753_v50 = vpop.permute.xlu0 %752 }
 0x418   :  { %v782_v26 = vmul.f32 %v753_v50, %v337_v37  ;;  %v2298_v27 = vrot.slane %v753_v50, %v3473_v44  ;;  %v339_v50 = vadd.f32 %v331_v40, %v292_v3 }
 0x419   :  { %v792_v38 = vadd.f32 %v791_v39, %v790_v8  ;;  %v797_v51 = vadd.f32 %v796_v11, %v795_v9  ;;  %v1093_v39 = vadd.f32 %v2771_v2, %v1085_v52  ;;  %v334_v11 = vld [vmem:[#allocation7 + $0xa8] sm:$0xff] }
 0x41a   :  { %v802_v59 = vsel %vm441_vm1, %v782_v26, 0.0  ;;  %v2320_v62 = vsel %vm518_vm3, %v2298_v27, %v2319_v35  ;;  %v1092_v27 = vadd.f32 %v1084_v33, %v3448_v14 }
 0x41b   :  { %v793_v53 = vrot.slane %v792_v38, 1  ;;  %v798_v58 = vrot.slane %v797_v51, 2  ;;  %v803_v5 = vrot.slane %v802_v59, 4  ;;  %v758_v6 = vpop.permute.xlu0 %757 }
 0x41c   :  { %v783_v42 = vmul.f32 %v758_v6, %v338_v41  ;;  %v2302_v37 = vrot.slane %v758_v6, %v3473_v44  ;;  %v845_v6 = vrot.slane %v3221_v17, 2 }
 0x41d   :  { %v799_v8 = vadd.f32 %v798_v58, %v797_v51  ;;  %v804_v9 = vadd.f32 %v803_v5, %v802_v59  ;;  %v794_v1 = vadd.f32 %v793_v53, %v792_v38  ;;  %v1086_v51 = vld [vmem:[#allocation5 + $0x38] sm:$0xff]  ;;  %v342_v38 = vadd.f32 %v3454_v16, %v334_v11 }
 0x41e   :  { %v809_v26 = vsel %vm441_vm1, %v783_v42, 0.0  ;;  %v2321_v35 = vsel %vm520_vm4, %v2302_v37, %v2320_v62  ;;  %v341_v42 = vadd.f32 %v333_v34, %v3456_v47  ;;  %v1094_v5 = vadd.f32 %v1086_v51, %v3461_v20 }
 0x41f   :  { %v800_v32 = vrot.slane %v799_v8, 1  ;;  %v805_v48 = vrot.slane %v804_v9, 2  ;;  %v810_v0 = vrot.slane %v809_v26, 4  ;;  %v763_v41 = vpop.permute.xlu0 %762  ;;  %v3489_v3 = vadd.f32 %v794_v1, %v3221_v17 }
 0x420   :  { %v784_v2 = vmul.f32 %v763_v41, %v339_v50  ;;  %v2306_v40 = vrot.slane %v763_v41, %v3473_v44 }
 0x421   :  { %v806_v59 = vadd.f32 %v805_v48, %v804_v9  ;;  %v811_v62 = vadd.f32 %v810_v0, %v809_v26  ;;  %v1120_v14 = vrot.slane %v3489_v3, %v3227_v22  ;;  %v801_v52 = vadd.f32 %v800_v32, %v799_v8 }
 0x422   :  { %v816_v53 = vsel %vm441_vm1, %v784_v2, 0.0  ;;  %v2322_v58 = vsel %vm522_vm5, %v2306_v40, %v2321_v35 }
 0x423   :  { %v807_v33 = vrot.slane %v806_v59, 1  ;;  %v812_v37 = vrot.slane %v811_v62, 2  ;;  %v817_v50 = vrot.slane %v816_v53, 4  ;;  %v768_v16 = vpop.permute.xlu0 %767  ;;  %v1149_v11 = vmul.f32 %v1120_v14, %v1092_v27 }
 0x424   :  { %v785_v47 = vmul.f32 %v768_v16, %v340_v45  ;;  %v2310_v9 = vrot.slane %v768_v16, %v3473_v44  ;;  %v3501_v34 = vadd.f32 %v844_v36, %v801_v52  ;;  %v2539_v32 = vsel %vm516_vm2, %v801_v52, %v794_v1 }
 0x425   :  { %v813_v8 = vadd.f32 %v812_v37, %v811_v62  ;;  %v818_v26 = vadd.f32 %v817_v50, %v816_v53  ;;  %v1157_v35 = vsel %vm441_vm1, %v1149_v11, 0.0  ;;  %v808_v48 = vadd.f32 %v807_v33, %v806_v59 }
 0x426   :  { %v823_v20 = vsel %vm441_vm1, %v785_v47, 0.0  ;;  %v2323_v0 = vsel %vm524_vm6, %v2310_v9, %v2322_v58  ;;  %1158 = vadd.xlane.f32.xlu1 %v1157_v35  ;;  %v1124_v27 = vrot.slane %v3501_v34, %v3227_v22  ;;  %v846_v45 = vrot.slane %v3221_v17, 3  ;;  %v1087_v58 = vld [vmem:[#allocation5 + $0x50] sm:$0xff] }
 0x427   :  { %v814_v41 = vrot.slane %v813_v8, 1  ;;  %v819_v36 = vrot.slane %v818_v26, 2  ;;  %v824_v51 = vrot.slane %v823_v20, 4  ;;  %v773_v2 = vpop.permute.xlu0 %772  ;;  %v3510_v1 = vadd.f32 %v845_v6, %v808_v48 }
 0x428   :  { %v786_v40 = vmul.f32 %v773_v2, %v341_v42  ;;  %v2314_v62 = vrot.slane %v773_v2, %v3473_v44  ;;  %v1150_v59 = vmul.f32 %v1124_v27, %v1093_v39  ;;  %v2540_v14 = vsel %vm518_vm3, %v808_v48, %v2539_v32 }
 0x429   :  { %v820_v52 = vadd.f32 %v819_v36, %v818_v26  ;;  %v825_v53 = vadd.f32 %v824_v51, %v823_v20  ;;  %v1128_v33 = vrot.slane %v3510_v1, %v3227_v22  ;;  %v815_v37 = vadd.f32 %v814_v41, %v813_v8  ;;  %v1088_v26 = vld [vmem:[#allocation5 + $0x68] sm:$0xff] }
 0x42a   :  { %v830_v50 = vsel %vm441_vm1, %v786_v40, 0.0  ;;  %v3518_v16 = vsel %vm526_vm7, %v2314_v62, %v2323_v0  ;;  %v1160_v6 = vsel %vm441_vm1, %v1150_v59, 0.0  ;;  %v847_v42 = vrot.slane %v3221_v17, 4 }
 0x42b   :  { %4306 = vst [vmem:[#allocation31_spill] sm:$0xff] %v3518_v16  ;;  %v821_v11 = vrot.slane %v820_v52, 1  ;;  %v826_v39 = vrot.slane %v825_v53, 2  ;;  %v831_v47 = vrot.slane %v830_v50, 4  ;;  %1161 = vadd.xlane.f32.xlu0 %v1160_v6  ;;  %v3522_v9 = vpop.permute.xlu0 %777  ;;  %v1151_v32 = vmul.f32 %v1128_v33, %v1094_v5 }
 0x42c   :  { %4307 = vst [vmem:[#allocation32_spill] sm:$0xff] %v3522_v9  ;;  %v1095_v35 = vadd.f32 %v3459_v18, %v1087_v58  ;;  %v787_v8 = vmul.f32 %v3522_v9, %v342_v38  ;;  %v3526_v48 = vadd.f32 %v846_v45, %v815_v37  ;;  %v2541_v20 = vsel %vm520_vm4, %v815_v37, %v2540_v14  ;;  %v1089_v58 = vld [vmem:[#allocation5 + $0x80] sm:$0xff] }
 0x42d   :  { %v827_v0 = vadd.f32 %v826_v39, %v825_v53  ;;  %v832_v27 = vadd.f32 %v831_v47, %v830_v50  ;;  %v1163_v41 = vsel %vm441_vm1, %v1151_v32, 0.0  ;;  %v822_v36 = vadd.f32 %v821_v11, %v820_v52  ;;  %v1102_v9 = vld [vmem:[#allocation7 + $0x20] sm:$0xff] }
 0x42e   :  { %v837_v51 = vsel %vm441_vm1, %v787_v8, 0.0  ;;  %1164 = vadd.xlane.f32.xlu1 %v1163_v41  ;;  %v1096_v2 = vadd.f32 %v1088_v26, %v3465_v21  ;;  %v1132_v5 = vrot.slane %v3526_v48, %v3227_v22  ;;  %v848_v18 = vrot.slane %v3221_v17, 5 }
 0x42f   :  { %v828_v38 = vrot.slane %v827_v0, 1  ;;  %v833_v45 = vrot.slane %v832_v27, 2  ;;  %v838_v40 = vrot.slane %v837_v51, 4  ;;  %v3535_v62 = vadd.f32 %v847_v42, %v822_v36  ;;  %v1090_v42 = vld [vmem:[#allocation5 + $0x98] sm:$0xff] }
 0x430   :  { %v1152_v59 = vmul.f32 %v1132_v5, %v1095_v35  ;;  %v2542_v14 = vsel %vm522_vm5, %v822_v36, %v2541_v20  ;;  %v849_v50 = vrot.slane %v3221_v17, 6  ;;  %v1097_v32 = vadd.f32 %v3463_v49, %v1089_v58 }
 0x431   :  { %v834_v53 = vadd.f32 %v833_v45, %v832_v27  ;;  %v839_v52 = vadd.f32 %v838_v40, %v837_v51  ;;  %v1136_v33 = vrot.slane %v3535_v62, %v3227_v22  ;;  %v829_v21 = vadd.f32 %v828_v38, %v827_v0  ;;  %v1091_v45 = vld [vmem:[#allocation5 + $0xb0] sm:$0xff] }
 0x432   :  { %v1166_v37 = vsel %vm441_vm1, %v1152_v59, 0.0  ;;  %v1098_v27 = vadd.f32 %v1090_v42, %v3469_v25  ;;  %v850_v41 = vrot.slane %v3221_v17, 7  ;;  %v1099_v25 = vadd.f32 %v3467_v23, %v1091_v45 }
 0x433   :  { %v835_v6 = vrot.slane %v834_v53, 1  ;;  %v840_v11 = vrot.slane %v839_v52, 2  ;;  %1167 = vadd.xlane.f32.xlu1 %v1166_v37  ;;  %v1153_v39 = vmul.f32 %v1136_v33, %v1096_v2  ;;  %v3542_v47 = vadd.f32 %v848_v18, %v829_v21 }
 0x434   :  { %v2543_v26 = vsel %vm524_vm6, %v829_v21, %v2542_v14  ;;  %v2327_v16 = vadd.s32 4294967256, %v3246_v28 }
 0x435   :  { %v841_v35 = vadd.f32 %v840_v11, %v839_v52  ;;  %v1169_v8 = vsel %vm441_vm1, %v1153_v39, 0.0  ;;  %v1140_v20 = vrot.slane %v3542_v47, %v3227_v22  ;;  %v836_v0 = vadd.f32 %v835_v6, %v834_v53 }
 0x437   :  { %v842_v36 = vrot.slane %v841_v35, 1  ;;  %1170 = vadd.xlane.f32.xlu1 %v1169_v8  ;;  %v1154_v51 = vmul.f32 %v1140_v20, %v1097_v32  ;;  %v3551_v2 = vadd.f32 %v849_v50, %v836_v0  ;;  %v2544_v49 = vsel %vm526_vm7, %v836_v0, %v2543_v26 }
 0x439   :  { %v1172_v5 = vsel %vm441_vm1, %v1154_v51, 0.0  ;;  %v1144_v18 = vrot.slane %v3551_v2, %v3227_v22  ;;  %v843_v38 = vadd.f32 %v842_v36, %v841_v35 }
 0x43b   :  { %1173 = vadd.xlane.f32.xlu1 %v1172_v5  ;;  %v1155_v40 = vmul.f32 %v1144_v18, %v1098_v27  ;;  %v3557_v59 = vadd.f32 %v850_v41, %v843_v38  ;;  %v3560_v17 = vsel %vm528_vm8, %v843_v38, %v2544_v49 }
 0x43c   :  { %4308 = vst [vmem:[#allocation33_spill] sm:$0xff] %v3560_v17 }
 0x43d   :  { %v1175_v14 = vsel %vm441_vm1, %v1155_v40, 0.0  ;;  %v1148_v53 = vrot.slane %v3557_v59, %v3227_v22 }
 0x43f   :  { %1176 = vadd.xlane.f32.xlu1 %v1175_v14  ;;  %v1156_v52 = vmul.f32 %v1148_v53, %v1099_v25 }
 0x441   :  { %v1178_v58 = vsel %vm441_vm1, %v1156_v52, 0.0 }
 0x443   :  { %1179 = vadd.xlane.f32.xlu1 %v1178_v58 }
 0x4b3   :  { %v3567_v33 = vpop.xlane.xlu1 %1158 }
 0x4b4   :  { %4309 = vst [vmem:[#allocation34_spill] sm:$0xff] %v3567_v33  ;;  %v1200_v42 = vrot.slane %v3567_v33, %v3252_v30 }
 0x4b8   :  { %v3575_v6 = vpop.xlane.xlu0 %1161 }
 0x4b9   :  { %4313 = vst [vmem:[#allocation38_spill] sm:$0xff] %v3575_v6  ;;  %v1204_v11 = vrot.slane %v3575_v6, %v3252_v30 }
 0x4bb   :  { %v3569_v21 = vpop.xlane.xlu1 %1164  ;;  %v1229_v8 = vsel %vm516_vm2, %v1204_v11, %v1200_v42 }
 0x4bc   :  { %4310 = vst [vmem:[#allocation35_spill] sm:$0xff] %v3569_v21  ;;  %v1208_v39 = vrot.slane %v3569_v21, %v3252_v30 }
 0x4be   :  { %v1230_v0 = vsel %vm518_vm3, %v1208_v39, %v1229_v8 }
 0x4c0   :  { %v3571_v37 = vpop.xlane.xlu1 %1167 }
 0x4c1   :  { %4311 = vst [vmem:[#allocation36_spill] sm:$0xff] %v3571_v37  ;;  %v1212_v32 = vrot.slane %v3571_v37, %v3252_v30 }
 0x4c3   :  { %v1231_v41 = vsel %vm520_vm4, %v1212_v32, %v1230_v0 }
 0x4c4   :  { %v3573_v50 = vpop.xlane.xlu1 %1170 }
 0x4c5   :  { %4312 = vst [vmem:[#allocation37_spill] sm:$0xff] %v3573_v50  ;;  %v1216_v26 = vrot.slane %v3573_v50, %v3252_v30 }
 0x4c7   :  { %v1232_v36 = vsel %vm522_vm5, %v1216_v26, %v1231_v41 }
 0x4c8   :  { %v3577_v23 = vpop.xlane.xlu1 %1173 }
 0x4c9   :  { %4314 = vst [vmem:[#allocation39_spill] sm:$0xff] %v3577_v23  ;;  %v1220_v20 = vrot.slane %v3577_v23, %v3252_v30 }
 0x4cb   :  { %v1233_v5 = vsel %vm524_vm6, %v1220_v20, %v1232_v36 }
 0x4cc   :  { %v3589_v35 = vpop.xlane.xlu1 %1176 }
 0x4cd   :  { %4315 = vst [vmem:[#allocation40_spill] sm:$0xff] %v3589_v35  ;;  %v1224_v27 = vrot.slane %v3589_v35, %v3252_v30 }
 0x4cf   :  { %v1234_v18 = vsel %vm526_vm7, %v1224_v27, %v1233_v5 }
 0x4d0   :  { %v3599_v51 = vpop.xlane.xlu1 %1179 }
 0x4d1   :  { %4316 = vst [vmem:[#allocation41_spill] sm:$0xff] %v3599_v51  ;;  %v1228_v49 = vrot.slane %v3599_v51, %v3252_v30 }
 0x4d3   :  { %v1235_v38 = vsel %vm528_vm8, %v1228_v49, %v1234_v18 }
 0x4d4   :  { %v1237_v45 = vsel %vm531_vm9, %v1235_v38, -inf }
 0x4d5   :  { %1238 = vmax.xlane.f32.xlu1 %v1237_v45 }
 0x562   :  { %v1239_v40 = vpop.xlane.xlu1 %1238 }
 0x563   :  { %v1244_v25 = vrot.slane %v1239_v40, %v3227_v22  ;;  %v1248_v14 = vrot.slane %v1239_v40, %v3293_v54  ;;  %v1252_v53 = vrot.slane %v1239_v40, %v3296_v55  ;;  %v1260_v52 = vrot.slane %v1239_v40, %v3305_v61 }
 0x564   :  { %v1256_v58 = vrot.slane %v1239_v40, %v3299_v56  ;;  %v1268_v32 = vrot.slane %v1239_v40, %v3317_v19  ;;  %v1264_v0 = vrot.slane %v1239_v40, %v3312_v12  ;;  %v1272_v5 = vrot.slane %v1239_v40, %v3322_v24 }
 0x565   :  { %v1281_v11 = vsub.f32 %v3567_v33, %v1244_v25  ;;  %v1282_v39 = vsub.f32 %v3575_v6, %v1248_v14  ;;  %v1283_v42 = vsub.f32 %v3569_v21, %v1252_v53  ;;  %v1285_v26 = vsub.f32 %v3573_v50, %v1260_v52 }
 0x566   :  { %v1284_v27 = vsub.f32 %v3571_v37, %v1256_v58  ;;  %v1287_v36 = vsub.f32 %v3589_v35, %v1268_v32  ;;  %v1286_v18 = vsub.f32 %v3577_v23, %v1264_v0  ;;  %v1288_v25 = vsub.f32 %v3599_v51, %v1272_v5  ;;  %v2653_v0 = vld [vmem:[%s4246_s4 + $0x20] sm:$0xff]  ;;  %v3669_v5 = vld [vmem:[%s4243_s1 + $0x10] sm:$0xff] }
 0x567   :  { %v1289_v8 = vmul.f32 1.442695, %v1281_v11  ;;  %v1291_v20 = vmul.f32 1.442695, %v1282_v39  ;;  %v1293_v41 = vmul.f32 1.442695, %v1283_v42 }
 0x568   :  { %v1297_v49 = vmul.f32 1.442695, %v1285_v26  ;;  %v1295_v38 = vmul.f32 1.442695, %v1284_v27  ;;  %v1301_v45 = vmul.f32 1.442695, %v1287_v36 }
 0x569   :  { %2898 = vpow2.f32 %v1289_v8  ;;  %v1299_v14 = vmul.f32 1.442695, %v1286_v18  ;;  %v1303_v58 = vmul.f32 1.442695, %v1288_v25  ;;  %v2643_v8 = vld [vmem:[%s4247_s5 + $0x10] sm:$0xff]  ;;  %v3680_v18 = vld [vmem:[%s4243_s1 + $0x18] sm:$0xff] }
 0x56a   :  { %2900 = vpow2.f32 %v1291_v20  ;;  %v2644_v20 = vld [vmem:[%s4247_s5 + $0x18] sm:$0xff]  ;;  %v3705_v25 = vld [vmem:[%s4243_s1 + $0x30] sm:$0xff] }
 0x56b   :  { %2902 = vpow2.f32 %v1293_v41  ;;  %v2841_v27 = vpack.c.bf16 %v2644_v20, %v2643_v8  ;;  %v2654_v41 = vld [vmem:[%s4246_s4 + $0x28] sm:$0xff] }
 0x56c   :  { %2904 = vpow2.f32 %v1297_v49  ;;  %v2845_v36 = vpack.c.bf16 %v2654_v41, %v2653_v0  ;;  %v3662_v49 = vld [vmem:[%s4243_s1 + $0x8] sm:$0xff] }
 0x56d   :  { %2906 = vpow2.f32 %v1295_v38  ;;  %2842 = vmatprep.subr.bf16.mxu1 %v2841_v27  ;;  %v3687_v38 = vld [vmem:[%s4243_s1 + $0x20] sm:$0xff] }
 0x56e   :  { %2908 = vpow2.f32 %v1301_v45  ;;  %2844 = vmatpush3.bf16.msra.mxu1 %v2841_v27  ;;  %2846 = vmatprep.subr.bf16.mxu0 %v2845_v36  ;;  %v3698_v45 = vld [vmem:[%s4243_s1 + $0x28] sm:$0xff] }
 0x56f   :  { %2910 = vpow2.f32 %v1299_v14  ;;  %2848 = vmatpush3.bf16.msra.mxu0 %v2845_v36  ;;  %v3716_v14 = vld [vmem:[%s4243_s1 + $0x38] sm:$0xff] }
 0x570   :  { %2912 = vpow2.f32 %v1303_v58  ;;  %v2969_v58 = vld [vmem:[%s4243_s1] sm:$0xff] }
 0x571   :  { %2786 = vmatmul.mubr.msk.f32.vlgmr.msra.gmra.mrb[8].mxu1 %vm74_vm0, %v3662_v49 }
 0x572   :  { %2788 = vmatprep.mubr.msk.f32.mxu1 %vm74_vm0, %v3669_v5  ;;  %2802 = vmatmul.mubr.msk.f32.vlgmr.msra.gmra.mrb[16].mxu0 %vm74_vm0, %v3662_v49 }
 0x573   :  { %v3623_v53 = vpop.eup %2898  ;;  %2804 = vmatprep.mubr.msk.f32.mxu0 %vm74_vm0, %v3669_v5 }
 0x574   :  { %v3625_v52 = vpop.eup %2900  ;;  %1314 = vperm.xlu1 %2863, %v3623_v53  }
 0x575   :  { %1317 = vperm.xlu0 %2864, %v3625_v52   ;;  %v3629_v40 = vpop.eup %2902  ;;  %2789 = vmatmul.mubr.msk.f32.gmra.mrb[10].mxu1 %vm74_vm0, %v3680_v18 }
 0x576   :  { %v3631_v11 = vpop.eup %2904  ;;  %2791 = vmatprep.mubr.msk.f32.mxu1 %vm74_vm0, %v3687_v38  ;;  %2805 = vmatmul.mubr.msk.f32.gmra.mrb[18].mxu0 %vm74_vm0, %v3680_v18 }
 0x577   :  { %v3635_v39 = vpop.eup %2906  ;;  %2807 = vmatprep.mubr.msk.f32.mxu0 %vm74_vm0, %v3687_v38 }
 0x578   :  { %1320 = vperm.xlu1 %2863, %v3629_v40   ;;  %v3637_v42 = vpop.eup %2908 }
 0x579   :  { %1326 = vperm.xlu0 %2864, %v3631_v11   ;;  %v3641_v32 = vpop.eup %2910  ;;  %2792 = vmatmul.mubr.msk.f32.gmra.mrb[12].mxu1 %vm74_vm0, %v3698_v45 }
 0x57a   :  { %v3644_v26 = vpop.eup %2912  ;;  %2794 = vmatprep.mubr.msk.f32.mxu1 %vm74_vm0, %v3705_v25  ;;  %2808 = vmatmul.mubr.msk.f32.gmra.mrb[20].mxu0 %vm74_vm0, %v3698_v45 }
 0x57b   :  { %2810 = vmatprep.mubr.msk.f32.mxu0 %vm74_vm0, %v3705_v25 }
 0x57c   :  { %1323 = vperm.xlu1 %2863, %v3635_v39  }
 0x57d   :  { %1332 = vperm.xlu0 %2864, %v3637_v42   ;;  %2795 = vmatmul.mubr.msk.f32.gmra.mrb[14].mxu1 %vm74_vm0, %v3716_v14 }
 0x57e   :  { %2811 = vmatmul.mubr.msk.f32.gmra.mrb[22].mxu0 %vm74_vm0, %v3716_v14  ;;  %2817 = vmatprep.mubr.msk.f32.mxu1 %vm74_vm0, %v2969_v58 }
 0x580   :  { %1329 = vperm.xlu1 %2863, %v3641_v32  }
 0x584   :  { %1335 = vperm.xlu1 %2863, %v3644_v26  }
 0x5f3   :  { %v1315_v8 = vpop.permute.xlu1 %1314 }
 0x5f4   :  { %v1318_v20 = vpop.permute.xlu0 %1317  ;;  %v1340_v41 = vrot.slane %v1315_v8, %v3252_v30 }
 0x5f5   :  { %v1344_v27 = vrot.slane %v1318_v20, %v3252_v30 }
 0x5f7   :  { %v1321_v0 = vpop.permute.xlu1 %1320  ;;  %v1369_v23 = vsel %vm516_vm2, %v1344_v27, %v1340_v41 }
 0x5f8   :  { %v1348_v36 = vrot.slane %v1321_v0, %v3252_v30  ;;  %v1327_v51 = vpop.permute.xlu0 %1326 }
 0x5f9   :  { %v1356_v58 = vrot.slane %v1327_v51, %v3252_v30 }
 0x5fa   :  { %v1370_v37 = vsel %vm518_vm3, %v1348_v36, %v1369_v23 }
 0x5fb   :  { %v1324_v35 = vpop.permute.xlu1 %1323 }
 0x5fc   :  { %v1352_v50 = vrot.slane %v1324_v35, %v3252_v30  ;;  %v1333_v6 = vpop.permute.xlu0 %1332 }
 0x5fd   :  { %v1364_v29 = vrot.slane %v1333_v6, %v3252_v30 }
 0x5fe   :  { %v1371_v21 = vsel %vm520_vm4, %v1352_v50, %v1370_v37 }
 0x5ff   :  { %v1330_v13 = vpop.permute.xlu1 %1329  ;;  %v1372_v8 = vsel %vm522_vm5, %v1356_v58, %v1371_v21 }
 0x600   :  { %v1360_v20 = vrot.slane %v1330_v13, %v3252_v30 }
 0x602   :  { %v1373_v0 = vsel %vm524_vm6, %v1360_v20, %v1372_v8 }
 0x603   :  { %v1336_v33 = vpop.permute.xlu1 %1335  ;;  %v1374_v35 = vsel %vm526_vm7, %v1364_v29, %v1373_v0 }
 0x604   :  { %v1368_v27 = vrot.slane %v1336_v33, %v3252_v30 }
 0x606   :  { %v1375_v23 = vsel %vm528_vm8, %v1368_v27, %v1374_v35 }
 0x607   :  { %v1377_v37 = vsel %vm531_vm9, %v1375_v23, 0.0 }
 0x608   :  { %1378 = vadd.xlane.f32.xlu0 %v1377_v37 }
 0x644   :  { %v2787_v50 = vpop.f32.mrb[8].mxu1 }
 0x645   :  { %v1044_v51 = vpop.f32.mrb[9].mxu1  ;;  %v1110_v46 = vadd.f32 %v2787_v50, %v1102_v9 }
 0x695   :  { %v1379_v41 = vpop.xlane.xlu0 %1378 }
 0x696   :  { %v1384_v13 = vrot.slane %v1379_v41, %v3227_v22  ;;  %v1388_v21 = vrot.slane %v1379_v41, %v3293_v54  ;;  %v1392_v6 = vrot.slane %v1379_v41, %v3296_v55  ;;  %v1396_v33 = vrot.slane %v1379_v41, %v3299_v56 }
 0x697   :  { %v1400_v36 = vrot.slane %v1379_v41, %v3305_v61  ;;  %v1404_v8 = vrot.slane %v1379_v41, %v3312_v12  ;;  %v1408_v35 = vrot.slane %v1379_v41, %v3317_v19  ;;  %v1412_v37 = vrot.slane %v1379_v41, %v3322_v24 }
 0x698   :  { %2914 = vrcp.f32 %v1384_v13 }
 0x699   :  { %2916 = vrcp.f32 %v1388_v21 }
 0x69a   :  { %2918 = vrcp.f32 %v1392_v6 }
 0x69b   :  { %2920 = vrcp.f32 %v1396_v33 }
 0x69c   :  { %2922 = vrcp.f32 %v1400_v36 }
 0x69d   :  { %2924 = vrcp.f32 %v1404_v8  ;;  %v3779_v8 = vpop.f32.mrb[16].mxu0 }
 0x69e   :  { %2926 = vrcp.f32 %v1408_v35 }
 0x69f   :  { %2928 = vrcp.f32 %v1412_v37 }
 0x6a2   :  { %v2915_v29 = vpop.eup %2914 }
 0x6a3   :  { %v3748_v58 = vmul.f32 %v2915_v29, %v3623_v53  ;;  %v2917_v20 = vpop.eup %2916 }
 0x6a4   :  { %v3753_v0 = vmul.f32 %v2917_v20, %v3625_v52  ;;  %v2919_v27 = vpop.eup %2918  ;;  %v2790_v52 = vpop.f32.mrb[10].mxu1 }
 0x6a5   :  { %4317 = vst [vmem:[#allocation42_spill] sm:$0xff] %v3748_v58  ;;  %1447 = vperm.xlu1 %2863, %v3748_v58   ;;  %v3758_v23 = vmul.f32 %v2919_v27, %v3629_v40  ;;  %v2921_v53 = vpop.eup %2920  ;;  %v1054_v6 = vpop.f32.mrb[11].mxu1 }
 0x6a6   :  { %4318 = vst [vmem:[#allocation43_spill] sm:$0xff] %v3753_v0  ;;  %v3763_v13 = vmul.f32 %v2921_v53, %v3635_v39  ;;  %v2923_v21 = vpop.eup %2922  ;;  %v3773_v36 = vpop.f32.mrb[12].mxu1 }
 0x6a7   :  { %4319 = vst [vmem:[#allocation44_spill] sm:$0xff] %v3758_v23  ;;  %v3767_v33 = vmul.f32 %v2923_v21, %v3631_v11  ;;  %v2925_v40 = vpop.eup %2924  ;;  %v1064_v39 = vpop.f32.mrb[13].mxu1 }
 0x6a8   :  { %4320 = vst [vmem:[#allocation45_spill] sm:$0xff] %v3763_v13  ;;  %v3771_v29 = vmul.f32 %v2925_v40, %v3641_v32  ;;  %v2927_v41 = vpop.eup %2926  ;;  %v1626_v11 = vpop.f32.mrb[17].mxu0 }
 0x6a9   :  { %1452 = vperm.xlu1 %2863, %v3753_v0   ;;  %4321 = vst [vmem:[#allocation46_spill] sm:$0xff] %v3767_v33  ;;  %v3777_v20 = vmul.f32 %v2927_v41, %v3637_v42  ;;  %v2929_v27 = vpop.eup %2928  ;;  %v3785_v32 = vpop.f32.mrb[14].mxu1 }
 0x6aa   :  { %4322 = vst [vmem:[#allocation47_spill] sm:$0xff] %v3771_v29  ;;  %v3783_v35 = vmul.f32 %v2929_v27, %v3644_v26  ;;  %v3787_v53 = vpop.f32.mrb[15].mxu1  ;;  %v3790_v37 = vpop.f32.mrb[18].mxu0  ;;  %v1101_v26 = vld [vmem:[#allocation7 + $0x8] sm:$0xff] }
 0x6ab   :  { %4323 = vst [vmem:[#allocation48_spill] sm:$0xff] %v3777_v20  ;;  %v3792_v21 = vpop.f32.mrb[19].mxu0  ;;  %v1109_v27 = vadd.f32 %v1101_v26, %v1044_v51  ;;  %v1111_v51 = vadd.f32 %v1103_v10, %v1054_v6 }
 0x6ac   :  { %4324 = vst [vmem:[#allocation49_spill] sm:$0xff] %v3783_v35  ;;  %v3794_v42 = vpop.f32.mrb[20].mxu0 }
 0x6ad   :  { %1457 = vperm.xlu1 %2863, %v3758_v23   ;;  %v3796_v40 = vpop.f32.mrb[21].mxu0 }
 0x6ae   :  { %v3798_v41 = vpop.f32.mrb[22].mxu0 }
 0x6af   :  { %v3800_v31 = vpop.f32.mrb[23].mxu0 }
 0x6b1   :  { %1462 = vperm.xlu1 %2863, %v3763_v13  }
 0x6b5   :  { %1467 = vperm.xlu1 %2863, %v3767_v33  }
 0x6b9   :  { %1472 = vperm.xlu1 %2863, %v3771_v29  }
 0x6bd   :  { %1477 = vperm.xlu1 %2863, %v3777_v20   ;;  %v1105_v20 = vld [vmem:[#allocation7 + $0x68] sm:$0xff] }
 0x6be   :  { %v1113_v43 = vadd.f32 %v1105_v20, %v1064_v39 }
 0x6c1   :  { %1482 = vperm.xlu1 %2863, %v3783_v35   ;;  %v3804_v35 = vsub.s32 %v2327_v16, %v3218_v15  ;;  %v1104_v16 = vld [vmem:[#allocation7 + $0x50] sm:$0xff] }
 0x724   :  { %v1448_v44 = vpop.permute.xlu1 %1447 }
 0x725   :  { %v1485_v29 = vmul.f32 %v1448_v44, %v1109_v27  ;;  %v2331_v60 = vrot.slane %v1448_v44, %v3804_v35  ;;  %v1112_v44 = vadd.f32 %v2790_v52, %v1104_v16  ;;  %v1775_v16 = vld [vmem:[#allocation5 + $0x28] sm:$0xff] }
 0x727   :  { %v1493_v33 = vsel %vm441_vm1, %v1485_v29, 0.0 }
 0x728   :  { %v1494_v63 = vrot.slane %v1493_v33, 4  ;;  %v1453_v13 = vpop.permute.xlu1 %1452 }
 0x729   :  { %v1486_v23 = vmul.f32 %v1453_v13, %v1110_v46  ;;  %v2335_v7 = vrot.slane %v1453_v13, %v3804_v35 }
 0x72a   :  { %v1495_v26 = vadd.f32 %v1494_v63, %v1493_v33 }
 0x72b   :  { %v1500_v28 = vsel %vm441_vm1, %v1486_v23, 0.0  ;;  %v2360_v9 = vsel %vm516_vm2, %v2335_v7, %v2331_v60  ;;  %v1774_v7 = vld [vmem:[#allocation5 + $0x10] sm:$0xff] }
 0x72c   :  { %v1496_v50 = vrot.slane %v1495_v26, 2  ;;  %v1501_v15 = vrot.slane %v1500_v28, 4  ;;  %v1458_v27 = vpop.permute.xlu1 %1457 }
 0x72d   :  { %v1487_v0 = vmul.f32 %v1458_v27, %v1111_v51  ;;  %v2339_v29 = vrot.slane %v1458_v27, %v3804_v35  ;;  %v1106_v27 = vld [vmem:[#allocation7 + $0x80] sm:$0xff] }
 0x72e   :  { %v1497_v4 = vadd.f32 %v1496_v50, %v1495_v26  ;;  %v1502_v17 = vadd.f32 %v1501_v15, %v1500_v28  ;;  %v1114_v39 = vadd.f32 %v3773_v36, %v1106_v27 }
 0x72f   :  { %v1507_v46 = vsel %vm441_vm1, %v1487_v0, 0.0  ;;  %v2361_v10 = vsel %vm518_vm3, %v2339_v29, %v2360_v9  ;;  %v1782_v0 = vadd.f32 %v1774_v7, %v1626_v11 }
 0x730   :  { %v1498_v63 = vrot.slane %v1497_v4, 1  ;;  %v1503_v13 = vrot.slane %v1502_v17, 2  ;;  %v1508_v23 = vrot.slane %v1507_v46, 4  ;;  %v1463_v6 = vpop.permute.xlu1 %1462 }
 0x731   :  { %v1488_v60 = vmul.f32 %v1463_v6, %v1112_v44  ;;  %v2343_v33 = vrot.slane %v1463_v6, %v3804_v35 }
 0x732   :  { %v1504_v51 = vadd.f32 %v1503_v13, %v1502_v17  ;;  %v1509_v58 = vadd.f32 %v1508_v23, %v1507_v46  ;;  %v1499_v26 = vadd.f32 %v1498_v63, %v1497_v4  ;;  %v1783_v63 = vadd.f32 %v3779_v8, %v1775_v16 }
 0x733   :  { %v1514_v15 = vsel %vm441_vm1, %v1488_v60, 0.0  ;;  %v2362_v28 = vsel %vm520_vm4, %v2343_v33, %v2361_v10  ;;  %v1776_v33 = vld [vmem:[#allocation5 + $0x40] sm:$0xff] }
 0x734   :  { %v1505_v52 = vrot.slane %v1504_v51, 1  ;;  %v1510_v9 = vrot.slane %v1509_v58, 2  ;;  %v1515_v50 = vrot.slane %v1514_v15, 4  ;;  %v1468_v29 = vpop.permute.xlu1 %1467  ;;  %v3818_v44 = vadd.f32 %v1499_v26, %v3489_v3 }
 0x735   :  { %v1489_v17 = vmul.f32 %v1468_v29, %v1113_v43  ;;  %v2347_v20 = vrot.slane %v1468_v29, %v3804_v35  ;;  %v1115_v3 = vadd.f32 %v1107_v57, %v3787_v53  ;;  %v1108_v29 = vld [vmem:[#allocation7 + $0xb0] sm:$0xff] }
 0x736   :  { %v1511_v4 = vadd.f32 %v1510_v9, %v1509_v58  ;;  %v1516_v46 = vadd.f32 %v1515_v50, %v1514_v15  ;;  %v1810_v10 = vrot.slane %v3818_v44, %v3227_v22  ;;  %v1506_v11 = vadd.f32 %v1505_v52, %v1504_v51 }
 0x737   :  { %v1521_v13 = vsel %vm441_vm1, %v1489_v17, 0.0  ;;  %v2363_v23 = vsel %vm522_vm5, %v2347_v20, %v2362_v28 }
 0x738   :  { %v1512_v6 = vrot.slane %v1511_v4, 1  ;;  %v1517_v7 = vrot.slane %v1516_v46, 2  ;;  %v1522_v36 = vrot.slane %v1521_v13, 4  ;;  %v1473_v43 = vpop.permute.xlu1 %1472  ;;  %v1839_v60 = vmul.f32 %v1810_v10, %v1782_v0 }
 0x739   :  { %v1490_v58 = vmul.f32 %v1473_v43, %v1114_v39  ;;  %v2351_v27 = vrot.slane %v1473_v43, %v3804_v35  ;;  %v3830_v15 = vadd.f32 %v1506_v11, %v3501_v34  ;;  %v2557_v8 = vsel %vm516_vm2, %v1506_v11, %v1499_v26 }
 0x73a   :  { %v1518_v51 = vadd.f32 %v1517_v7, %v1516_v46  ;;  %v1523_v52 = vadd.f32 %v1522_v36, %v1521_v13  ;;  %v1847_v28 = vsel %vm441_vm1, %v1839_v60, 0.0  ;;  %v1513_v9 = vadd.f32 %v1512_v6, %v1511_v4 }
 0x73b   :  { %v1528_v57 = vsel %vm441_vm1, %v1490_v58, 0.0  ;;  %v2364_v53 = vsel %vm524_vm6, %v2351_v27, %v2363_v23  ;;  %1848 = vadd.xlane.f32.xlu0 %v1847_v28  ;;  %v1784_v0 = vadd.f32 %v1776_v33, %v3792_v21  ;;  %v1814_v50 = vrot.slane %v3830_v15, %v3227_v22  ;;  %v1778_v27 = vld [vmem:[#allocation5 + $0x70] sm:$0xff] }
 0x73c   :  { %v1519_v16 = vrot.slane %v1518_v51, 1  ;;  %v1524_v34 = vrot.slane %v1523_v52, 2  ;;  %v1529_v39 = vrot.slane %v1528_v57, 4  ;;  %v1478_v26 = vpop.permute.xlu1 %1477  ;;  %v3840_v17 = vadd.f32 %v1513_v9, %v3510_v1 }
 0x73d   :  { %v1491_v20 = vmul.f32 %v1478_v26, %v1115_v3  ;;  %v2355_v4 = vrot.slane %v1478_v26, %v3804_v35  ;;  %v1840_v46 = vmul.f32 %v1814_v50, %v1783_v63  ;;  %v2558_v10 = vsel %vm518_vm3, %v1513_v9, %v2557_v8  ;;  %v1777_v63 = vld [vmem:[#allocation5 + $0x58] sm:$0xff] }
 0x73e   :  { %v1525_v11 = vadd.f32 %v1524_v34, %v1523_v52  ;;  %v1530_v13 = vadd.f32 %v1529_v39, %v1528_v57  ;;  %v1818_v21 = vrot.slane %v3840_v17, %v3227_v22  ;;  %v1520_v23 = vadd.f32 %v1519_v16, %v1518_v51 }
 0x73f   :  { %v1116_v6 = vadd.f32 %v3785_v32, %v1108_v29  ;;  %v1535_v7 = vsel %vm441_vm1, %v1491_v20, 0.0  ;;  %v3849_v36 = vsel %vm526_vm7, %v2355_v4, %v2364_v53  ;;  %v1850_v1 = vsel %vm441_vm1, %v1840_v46, 0.0 }
 0x740   :  { %v1526_v3 = vrot.slane %v1525_v11, 1  ;;  %v1531_v43 = vrot.slane %v1530_v13, 2  ;;  %v1536_v60 = vrot.slane %v1535_v7, 4  ;;  %1851 = vadd.xlane.f32.xlu1 %v1850_v1  ;;  %v3852_v33 = vpop.permute.xlu1 %1482  ;;  %v1841_v58 = vmul.f32 %v1818_v21, %v1784_v0 }
 0x741   :  { %v1492_v8 = vmul.f32 %v3852_v33, %v1116_v6  ;;  %v3856_v32 = vadd.f32 %v1520_v23, %v3526_v48  ;;  %v2559_v51 = vsel %vm520_vm4, %v1520_v23, %v2558_v10  ;;  %v1785_v53 = vadd.f32 %v3790_v37, %v1777_v63  ;;  %v1779_v37 = vld [vmem:[#allocation5 + $0x88] sm:$0xff]  ;;  %v1780_v6 = vld [vmem:[#allocation5 + $0xa0] sm:$0xff] }
 0x742   :  { %v1532_v52 = vadd.f32 %v1531_v43, %v1530_v13  ;;  %v1537_v28 = vadd.f32 %v1536_v60, %v1535_v7  ;;  %v1853_v9 = vsel %vm441_vm1, %v1841_v58, 0.0  ;;  %v1527_v57 = vadd.f32 %v1526_v3, %v1525_v11 }
 0x743   :  { %v1542_v50 = vsel %vm441_vm1, %v1492_v8, 0.0  ;;  %1854 = vadd.xlane.f32.xlu0 %v1853_v9  ;;  %v1786_v0 = vadd.f32 %v1778_v27, %v3796_v40  ;;  %v1822_v16 = vrot.slane %v3856_v32, %v3227_v22  ;;  %v1787_v7 = vadd.f32 %v3794_v42, %v1779_v37  ;;  %v1781_v9 = vld [vmem:[#allocation5 + $0xb8] sm:$0xff] }
 0x744   :  { %v1533_v34 = vrot.slane %v1532_v52, 1  ;;  %v1538_v48 = vrot.slane %v1537_v28, 2  ;;  %v1543_v29 = vrot.slane %v1542_v50, 4  ;;  %v3866_v39 = vadd.f32 %v1527_v57, %v3535_v62 }
 0x745   :  { %v1842_v26 = vmul.f32 %v1822_v16, %v1785_v53  ;;  %v2560_v20 = vsel %vm522_vm5, %v1527_v57, %v2559_v51  ;;  %v1788_v58 = vadd.f32 %v1780_v6, %v3800_v31 }
 0x746   :  { %v1539_v4 = vadd.f32 %v1538_v48, %v1537_v28  ;;  %v1544_v46 = vadd.f32 %v1543_v29, %v1542_v50  ;;  %v1826_v10 = vrot.slane %v3866_v39, %v3227_v22  ;;  %v1534_v11 = vadd.f32 %v1533_v34, %v1532_v52 }
 0x747   :  { %v1856_v40 = vsel %vm441_vm1, %v1842_v26, 0.0 }
 0x748   :  { %v1540_v13 = vrot.slane %v1539_v4, 1  ;;  %v1545_v21 = vrot.slane %v1544_v46, 2  ;;  %1857 = vadd.xlane.f32.xlu0 %v1856_v40  ;;  %v1843_v23 = vmul.f32 %v1826_v10, %v1786_v0  ;;  %v3873_v62 = vadd.f32 %v1534_v11, %v3542_v47 }
 0x749   :  { %v2561_v1 = vsel %vm524_vm6, %v1534_v11, %v2560_v20 }
 0x74a   :  { %v1546_v3 = vadd.f32 %v1545_v21, %v1544_v46  ;;  %v1859_v43 = vsel %vm441_vm1, %v1843_v23, 0.0  ;;  %v1830_v63 = vrot.slane %v3873_v62, %v3227_v22  ;;  %v1541_v60 = vadd.f32 %v1540_v13, %v1539_v4 }
 0x74c   :  { %v1547_v27 = vrot.slane %v1546_v3, 1  ;;  %1860 = vadd.xlane.f32.xlu0 %v1859_v43  ;;  %v1844_v8 = vmul.f32 %v1830_v63, %v1787_v7  ;;  %v3882_v51 = vadd.f32 %v1541_v60, %v3551_v2  ;;  %v2562_v47 = vsel %vm526_vm7, %v1541_v60, %v2561_v1 }
 0x74d   :  { %v1789_v2 = vadd.f32 %v3798_v41, %v1781_v9 }
 0x74e   :  { %v1862_v42 = vsel %vm441_vm1, %v1844_v8, 0.0  ;;  %v1834_v52 = vrot.slane %v3882_v51, %v3227_v22  ;;  %v1548_v28 = vadd.f32 %v1547_v27, %v1546_v3 }
 0x750   :  { %1863 = vadd.xlane.f32.xlu0 %v1862_v42  ;;  %v1845_v57 = vmul.f32 %v1834_v52, %v1788_v58  ;;  %v3889_v53 = vadd.f32 %v1548_v28, %v3557_v59  ;;  %v3892_v31 = vsel %vm528_vm8, %v1548_v28, %v2562_v47 }
 0x752   :  { %v1865_v50 = vsel %vm441_vm1, %v1845_v57, 0.0  ;;  %v1838_v0 = vrot.slane %v3889_v53, %v3227_v22 }
 0x754   :  { %1866 = vadd.xlane.f32.xlu0 %v1865_v50  ;;  %v1846_v16 = vmul.f32 %v1838_v0, %v1789_v2 }
 0x756   :  { %v1868_v34 = vsel %vm441_vm1, %v1846_v16, 0.0 }
 0x758   :  { %1869 = vadd.xlane.f32.xlu0 %v1868_v34 }
 0x7c8   :  { %v3899_v48 = vpop.xlane.xlu0 %1848 }
 0x7c9   :  { %v1890_v37 = vrot.slane %v3899_v48, %v3252_v30 }
 0x7cd   :  { %v3907_v20 = vpop.xlane.xlu1 %1851 }
 0x7ce   :  { %v1894_v4 = vrot.slane %v3907_v20, %v3252_v30 }
 0x7d0   :  { %v3901_v29 = vpop.xlane.xlu0 %1854  ;;  %v1919_v13 = vsel %vm516_vm2, %v1894_v4, %v1890_v37 }
 0x7d1   :  { %v1898_v46 = vrot.slane %v3901_v29, %v3252_v30 }
 0x7d3   :  { %v1920_v23 = vsel %vm518_vm3, %v1898_v46, %v1919_v13 }
 0x7d5   :  { %v3903_v59 = vpop.xlane.xlu0 %1857 }
 0x7d6   :  { %v1902_v10 = vrot.slane %v3903_v59, %v3252_v30 }
 0x7d8   :  { %v1921_v7 = vsel %vm520_vm4, %v1902_v10, %v1920_v23 }
 0x7d9   :  { %v3905_v26 = vpop.xlane.xlu0 %1860 }
 0x7da   :  { %v1906_v11 = vrot.slane %v3905_v26, %v3252_v30 }
 0x7dc   :  { %v1922_v1 = vsel %vm522_vm5, %v1906_v11, %v1921_v7 }
 0x7dd   :  { %v3909_v41 = vpop.xlane.xlu0 %1863 }
 0x7de   :  { %v1910_v21 = vrot.slane %v3909_v41, %v3252_v30 }
 0x7e0   :  { %v1923_v63 = vsel %vm524_vm6, %v1910_v21, %v1922_v1 }
 0x7e1   :  { %v3921_v40 = vpop.xlane.xlu0 %1866 }
 0x7e2   :  { %v1914_v6 = vrot.slane %v3921_v40, %v3252_v30 }
 0x7e4   :  { %v1924_v60 = vsel %vm526_vm7, %v1914_v6, %v1923_v63 }
 0x7e5   :  { %v3931_v3 = vpop.xlane.xlu0 %1869 }
 0x7e6   :  { %v1918_v43 = vrot.slane %v3931_v3, %v3252_v30 }
 0x7e8   :  { %v1925_v58 = vsel %vm528_vm8, %v1918_v43, %v1924_v60 }
 0x7e9   :  { %v1927_v27 = vsel %vm531_vm9, %v1925_v58, -inf }
 0x7ea   :  { %1928 = vmax.xlane.f32.xlu0 %v1927_v27 }
 0x877   :  { %v1929_v8 = vpop.xlane.xlu0 %1928 }
 0x878   :  { %v1934_v47 = vrot.slane %v1929_v8, %v3227_v22  ;;  %v1938_v42 = vrot.slane %v1929_v8, %v3293_v54  ;;  %v1942_v52 = vrot.slane %v1929_v8, %v3296_v55  ;;  %v1946_v28 = vrot.slane %v1929_v8, %v3299_v56 }
 0x879   :  { %v1950_v9 = vrot.slane %v1929_v8, %v3305_v61  ;;  %v1954_v0 = vrot.slane %v1929_v8, %v3312_v12  ;;  %v1958_v46 = vrot.slane %v1929_v8, %v3317_v19  ;;  %v1962_v11 = vrot.slane %v1929_v8, %v3322_v24 }
 0x87a   :  { %v1971_v57 = vsub.f32 %v3899_v48, %v1934_v47  ;;  %v1972_v2 = vsub.f32 %v3907_v20, %v1938_v42  ;;  %v1973_v50 = vsub.f32 %v3901_v29, %v1942_v52  ;;  %v1974_v16 = vsub.f32 %v3903_v59, %v1946_v28 }
 0x87b   :  { %v1975_v37 = vsub.f32 %v3905_v26, %v1950_v9  ;;  %v1976_v13 = vsub.f32 %v3909_v41, %v1954_v0  ;;  %v1977_v23 = vsub.f32 %v3921_v40, %v1958_v46  ;;  %v1978_v7 = vsub.f32 %v3931_v3, %v1962_v11  ;;  %v2663_v9 = vld [vmem:[%s4247_s5 + $0x20] sm:$0xff] }
 0x87c   :  { %v1979_v34 = vmul.f32 1.442695, %v1971_v57  ;;  %v1981_v4 = vmul.f32 1.442695, %v1972_v2  ;;  %v1983_v10 = vmul.f32 1.442695, %v1973_v50 }
 0x87d   :  { %v1985_v21 = vmul.f32 1.442695, %v1974_v16  ;;  %v1987_v6 = vmul.f32 1.442695, %v1975_v37  ;;  %v1989_v1 = vmul.f32 1.442695, %v1976_v13 }
 0x87e   :  { %2930 = vpow2.f32 %v1979_v34  ;;  %v1991_v43 = vmul.f32 1.442695, %v1977_v23  ;;  %v1993_v63 = vmul.f32 1.442695, %v1978_v7  ;;  %v2664_v57 = vld [vmem:[%s4247_s5 + $0x28] sm:$0xff]  ;;  %s3071_s5 = smov 72  }
 0x87f   :  { %2932 = vpow2.f32 %v1981_v4  ;;  %v2849_v2 = vpack.c.bf16 %v2664_v57, %v2663_v9 }
 0x880   :  { %2934 = vpow2.f32 %v1983_v10 }
 0x881   :  { %2936 = vpow2.f32 %v1985_v21  ;;  %2850 = vmatprep.subr.bf16.mxu1 %v2849_v2 }
 0x882   :  { %2938 = vpow2.f32 %v1987_v6  ;;  %2852 = vmatpush3.bf16.msra.mxu1 %v2849_v2 }
 0x883   :  { %2940 = vpow2.f32 %v1989_v1 }
 0x884   :  { %2942 = vpow2.f32 %v1991_v43 }
 0x885   :  { %2944 = vpow2.f32 %v1993_v63  ;;  %2818 = vmatmul.mubr.msk.f32.vlgmr.msra.gmra.mrb[16].mxu1 %vm74_vm0, %v3662_v49 }
 0x886   :  { %2820 = vmatprep.mubr.msk.f32.mxu1 %vm74_vm0, %v3669_v5 }
 0x888   :  { %v3955_v60 = vpop.eup %2930 }
 0x889   :  { %v3957_v58 = vpop.eup %2932  ;;  %2004 = vperm.xlu0 %2864, %v3955_v60   ;;  %2821 = vmatmul.mubr.msk.f32.gmra.mrb[18].mxu1 %vm74_vm0, %v3680_v18 }
 0x88a   :  { %2007 = vperm.xlu1 %2863, %v3957_v58   ;;  %v3961_v27 = vpop.eup %2934  ;;  %2823 = vmatprep.mubr.msk.f32.mxu1 %vm74_vm0, %v3687_v38 }
 0x88b   :  { %v3963_v8 = vpop.eup %2936 }
 0x88c   :  { %v3967_v47 = vpop.eup %2938 }
 0x88d   :  { %2010 = vperm.xlu0 %2864, %v3961_v27   ;;  %v3969_v42 = vpop.eup %2940  ;;  %2824 = vmatmul.mubr.msk.f32.gmra.mrb[20].mxu1 %vm74_vm0, %v3698_v45 }
 0x88e   :  { %2013 = vperm.xlu1 %2863, %v3963_v8   ;;  %v3973_v52 = vpop.eup %2942  ;;  %2826 = vmatprep.mubr.msk.f32.mxu1 %vm74_vm0, %v3705_v25 }
 0x88f   :  { %v3975_v28 = vpop.eup %2944 }
 0x891   :  { %2016 = vperm.xlu0 %2864, %v3967_v47   ;;  %2827 = vmatmul.mubr.msk.f32.gmra.mrb[22].mxu1 %vm74_vm0, %v3716_v14 }
 0x892   :  { %2019 = vperm.xlu1 %2863, %v3969_v42  }
 0x895   :  { %2022 = vperm.xlu0 %2864, %v3973_v52  }
 0x896   :  { %2025 = vperm.xlu1 %2863, %v3975_v28  }
 0x908   :  { %v2005_v50 = vpop.permute.xlu0 %2004 }
 0x909   :  { %v2008_v49 = vpop.permute.xlu1 %2007  ;;  %v2030_v5 = vrot.slane %v2005_v50, %v3252_v30 }
 0x90a   :  { %v2034_v0 = vrot.slane %v2008_v49, %v3252_v30 }
 0x90c   :  { %v2011_v16 = vpop.permute.xlu0 %2010  ;;  %v2059_v38 = vsel %vm516_vm2, %v2034_v0, %v2030_v5 }
 0x90d   :  { %v2014_v18 = vpop.permute.xlu1 %2013  ;;  %v2038_v34 = vrot.slane %v2011_v16, %v3252_v30 }
 0x90e   :  { %v2042_v45 = vrot.slane %v2014_v18, %v3252_v30 }
 0x90f   :  { %v2060_v4 = vsel %vm518_vm3, %v2038_v34, %v2059_v38  ;;  %v4325_v34 = vld [vmem:[#allocation22_spill] sm:$0xff] }
 0x910   :  { %v2017_v25 = vpop.permute.xlu0 %2016  ;;  %v2061_v10 = vsel %vm520_vm4, %v2042_v45, %v2060_v4  ;;  %v4326_v38 = vld [vmem:[#allocation42_spill] sm:$0xff] }
 0x911   :  { %v2020_v46 = vpop.permute.xlu1 %2019  ;;  %v2046_v14 = vrot.slane %v2017_v25, %v3252_v30  ;;  %v1437_v45 = vadd.f32 %v4326_v38, %v4325_v34  ;;  %v4327_v25 = vld [vmem:[#allocation28_spill] sm:$0xff] }
 0x912   :  { %v2050_v37 = vrot.slane %v2020_v46, %v3252_v30  ;;  %v4328_v46 = vld [vmem:[#allocation48_spill] sm:$0xff] }
 0x913   :  { %v2062_v11 = vsel %vm522_vm5, %v2046_v14, %v2061_v10 }
 0x914   :  { %v2023_v13 = vpop.permute.xlu0 %2022  ;;  %v2063_v7 = vsel %vm524_vm6, %v2050_v37, %v2062_v11 }
 0x915   :  { %v2026_v21 = vpop.permute.xlu1 %2025  ;;  %v2054_v23 = vrot.slane %v2023_v13, %v3252_v30 }
 0x916   :  { %v2058_v6 = vrot.slane %v2026_v21, %v3252_v30 }
 0x917   :  { %v2064_v1 = vsel %vm526_vm7, %v2054_v23, %v2063_v7 }
 0x918   :  { %v2065_v43 = vsel %vm528_vm8, %v2058_v6, %v2064_v1 }
 0x919   :  { %v2067_v63 = vsel %vm531_vm9, %v2065_v43, 0.0 }
 0x91a   :  { %2068 = vadd.xlane.f32.xlu0 %v2067_v63 }
 0x958   :  { %v4015_v9 = vpop.f32.mrb[16].mxu1 }
 0x959   :  { %v4017_v57 = vpop.f32.mrb[17].mxu1 }
 0x9a7   :  { %v2069_v2 = vpop.xlane.xlu0 %2068 }
 0x9a8   :  { %v2074_v50 = vrot.slane %v2069_v2, %v3227_v22  ;;  %v2078_v49 = vrot.slane %v2069_v2, %v3293_v54  ;;  %v2098_v30 = vrot.slane %v2069_v2, %v3317_v19  ;;  %v2082_v0 = vrot.slane %v2069_v2, %v3296_v55 }
 0x9a9   :  { %v2086_v5 = vrot.slane %v2069_v2, %v3299_v56  ;;  %v2090_v18 = vrot.slane %v2069_v2, %v3305_v61  ;;  %v1443_v55 = vadd.f32 %v4328_v46, %v4327_v25  ;;  %v2094_v56 = vrot.slane %v2069_v2, %v3312_v12  ;;  %v4036_v12 = vpop.f32.mrb[18].mxu1  ;;  %v4336_v25 = vld [vmem:[#allocation26_spill] sm:$0xff] }
 0x9aa   :  { %2946 = vrcp.f32 %v2074_v50  ;;  %v2102_v23 = vrot.slane %v2069_v2, %v3322_v24  ;;  %v1744_v7 = vpop.f32.mrb[19].mxu1  ;;  %v4330_v2 = vld [vmem:[#allocation23_spill] sm:$0xff]  ;;  %v4337_v46 = vld [vmem:[#allocation46_spill] sm:$0xff] }
 0x9ab   :  { %2948 = vrcp.f32 %v2078_v49  ;;  %v4041_v63 = vpop.f32.mrb[20].mxu1  ;;  %v4331_v50 = vld [vmem:[#allocation43_spill] sm:$0xff] }
 0x9ac   :  { %2950 = vrcp.f32 %v2098_v30  ;;  %v1754_v24 = vpop.f32.mrb[21].mxu1  ;;  %v1438_v49 = vadd.f32 %v4331_v50, %v4330_v2  ;;  %v1793_v50 = vld [vmem:[#allocation7 + $0x40] sm:$0xff] }
 0x9ad   :  { %2952 = vrcp.f32 %v2082_v0 }
 0x9ae   :  { %2954 = vrcp.f32 %v2086_v5  ;;  %v4046_v5 = vpop.f32.mrb[22].mxu1 }
 0x9af   :  { %2956 = vrcp.f32 %v2090_v18  ;;  %v4050_v34 = vpop.f32.mrb[23].mxu1 }
 0x9b0   :  { %2958 = vrcp.f32 %v2094_v56  ;;  %v4338_v56 = vld [vmem:[#allocation27_spill] sm:$0xff] }
 0x9b1   :  { %2960 = vrcp.f32 %v2102_v23 }
 0x9b4   :  { %v2947_v16 = vpop.eup %2946 }
 0x9b5   :  { %v2112_v22 = vmul.f32 %v2947_v16, %v3955_v60  ;;  %v2949_v54 = vpop.eup %2948  ;;  %v4332_v16 = vld [vmem:[#allocation24_spill] sm:$0xff] }
 0x9b6   :  { %v2951_v4 = vpop.eup %2950  ;;  %v2114_v37 = vmul.f32 %v2949_v54, %v3957_v58  ;;  %v4329_v58 = vld [vmem:[#allocation33_spill] sm:$0xff] }
 0x9b7   :  { %2137 = vperm.xlu1 %2863, %v2112_v22   ;;  %v2127_v19 = vadd.f32 %v2112_v22, %v1437_v45  ;;  %v2124_v14 = vmul.f32 %v2951_v4, %v3973_v52  ;;  %v2953_v10 = vpop.eup %2952  ;;  %v4334_v45 = vld [vmem:[#allocation25_spill] sm:$0xff] }
 0x9b8   :  { %v2116_v60 = vmul.f32 %v2953_v10, %v3961_v27  ;;  %v2955_v21 = vpop.eup %2954  ;;  %v2128_v0 = vadd.f32 %v2114_v37, %v1438_v49  ;;  %v4335_v22 = vld [vmem:[#allocation45_spill] sm:$0xff] }
 0x9b9   :  { %v2247_v61 = vmul.f32 0.33333334, %v2127_v19  ;;  %v2133_v11 = vadd.f32 %v2124_v14, %v1443_v55  ;;  %v2118_v52 = vmul.f32 %v2955_v21, %v3963_v8  ;;  %v2957_v6 = vpop.eup %2956  ;;  %v1440_v54 = vadd.f32 %v4335_v22, %v4334_v45 }
 0x9ba   :  { %v2120_v1 = vmul.f32 %v2957_v6, %v3967_v47  ;;  %v2959_v27 = vpop.eup %2958  ;;  %v4333_v47 = vld [vmem:[#allocation44_spill] sm:$0xff] }
 0x9bb   :  { %2142 = vperm.xlu1 %2863, %v2114_v37   ;;  %2418 = vperm.xlu0 %2864, %v2247_v61   ;;  %v2253_v13 = vmul.f32 0.33333334, %v2133_v11  ;;  %v2122_v43 = vmul.f32 %v2959_v27, %v3969_v42  ;;  %v2961_v8 = vpop.eup %2960  ;;  %v1439_v18 = vadd.f32 %v4333_v47, %v4332_v16  ;;  %v2248_v42 = vmul.f32 0.33333334, %v2128_v0  ;;  %v4339_v37 = vld [vmem:[#allocation47_spill] sm:$0xff] }
 0x9bc   :  { %v2126_v30 = vmul.f32 %v2961_v8, %v3975_v28  ;;  %v2130_v19 = vadd.f32 %v2118_v52, %v1440_v54  ;;  %v1441_v28 = vadd.f32 %v4337_v46, %v4336_v25  ;;  %v1442_v61 = vadd.f32 %v4339_v37, %v4338_v56  ;;  %v1792_v27 = vld [vmem:[#allocation7 + $0x28] sm:$0xff]  ;;  %v4342_v25 = vld [vmem:[#allocation30_spill] sm:$0xff]  ;;  %v4343_v46 = vld [vmem:[#allocation32_spill] sm:$0xff] }
 0x9bd   :  { %v2129_v38 = vadd.f32 %v2116_v60, %v1439_v18  ;;  %v1801_v47 = vadd.f32 %v1793_v50, %v1744_v7  ;;  %v1794_v18 = vld [vmem:[#allocation7 + $0x58] sm:$0xff] }
 0x9be   :  { %v2131_v55 = vadd.f32 %v2120_v1, %v1441_v28  ;;  %v2132_v11 = vadd.f32 %v2122_v43, %v1442_v61  ;;  %v2318_v28 = vrot.slane %v4343_v46, %v4342_v25  ;;  %v1797_v25 = vld [vmem:[#allocation7 + $0xa0] sm:$0xff] }
 0x9bf   :  { %2147 = vperm.xlu1 %2863, %v2116_v60   ;;  %2436 = vperm.xlu0 %2864, %v2253_v13   ;;  %v2249_v4 = vmul.f32 0.33333334, %v2129_v38  ;;  %v4340_v13 = vld [vmem:[#allocation29_spill] sm:$0xff]  ;;  %v4353_v46 = vld [vmem:[#allocation18_spill] sm:$0xff] }
 0x9c0   :  { %v2251_v10 = vmul.f32 0.33333334, %v2131_v55  ;;  %v4341_v60 = vld [vmem:[#allocation49_spill] sm:$0xff]  ;;  %v2252_v23 = vmul.f32 0.33333334, %v2132_v11 }
 0x9c1   :  { %v1444_v21 = vadd.f32 %v4341_v60, %v4340_v13  ;;  %v1796_v13 = vld [vmem:[#allocation7 + $0x88] sm:$0xff] }
 0x9c2   :  { %v4344_v60 = vld [vmem:[#allocation31_spill] sm:$0xff] }
 0x9c3   :  { %2152 = vperm.xlu1 %2863, %v2118_v52   ;;  %2546 = vrot.lane.b32.xlu0 %v4329_v58, %s3071_s5  ;;  %v2134_v6 = vadd.f32 %v2126_v30, %v1444_v21  ;;  %v1791_v58 = vld [vmem:[#allocation7 + $0x10] sm:$0xff]  ;;  %v4083_v21 = vsel %vm528_vm8, %v2318_v28, %v4344_v60  ;;  %v4354_v28 = vld [vmem:[#allocation37_spill] sm:$0xff] }
 0x9c4   :  { %v4357_v60 = vld [vmem:[#allocation13_spill] sm:$0xff] }
 0x9c5   :  { %v2254_v52 = vmul.f32 0.33333334, %v2134_v6  ;;  %v4346_v6 = vld [vmem:[#allocation34_spill] sm:$0xff] }
 0x9c7   :  { %2157 = vperm.xlu1 %2863, %v2120_v1   ;;  %v1799_v1 = vadd.f32 %v1791_v58, %v4017_v57 }
 0x9cb   :  { %2162 = vperm.xlu1 %2863, %v2122_v43   ;;  %v1800_v43 = vadd.f32 %v4015_v9, %v1792_v27  ;;  %v1802_v9 = vadd.f32 %v4036_v12, %v1794_v18  ;;  %v4348_v27 = vld [vmem:[#allocation38_spill] sm:$0xff]  ;;  %v4352_v18 = vld [vmem:[#allocation36_spill] sm:$0xff] }
 0x9cf   :  { %2167 = vperm.xlu1 %2863, %v2124_v14   ;;  %v2250_v14 = vmul.f32 0.33333334, %v2130_v19  ;;  %v1795_v19 = vld [vmem:[#allocation7 + $0x70] sm:$0xff] }
 0x9d0   :  { %v1803_v61 = vadd.f32 %v1795_v19, %v1754_v24 }
 0x9d3   :  { %2172 = vperm.xlu1 %2863, %v2126_v30  }
 0x9d7   :  { %2421 = vperm.xlu1 %2863, %v2248_v42  }
 0x9db   :  { %2424 = vperm.xlu1 %2863, %v2249_v4  }
 0x9df   :  { %2427 = vperm.xlu1 %2863, %v2250_v14  }
 0x9e3   :  { %2430 = vperm.xlu1 %2863, %v2251_v10  }
 0x9e7   :  { %2433 = vperm.xlu1 %2863, %v2252_v23   ;;  %v4345_v23 = vld [vmem:[#allocation15_spill] sm:$0xff] }
 0x9eb   :  { %2439 = vperm.xlu1 %2863, %v2254_v52   ;;  %v1181_v52 = vadd.f32 %v4346_v6, %v4345_v23  ;;  %v2490_v23 = vadd.s32 4294967232, %v4357_v60 }
 0x9ef   :  { %2564 = vrot.lane.b32.xlu1 %v3892_v31, %s3072_s13 }
 0xa36   :  { %v4062_v8 = vpop.permute.xlu1 %2137 }
 0xa37   :  { %v2175_v2 = vmul.f32 %v4062_v8, %v1799_v1  ;;  %v4347_v1 = vld [vmem:[#allocation14_spill] sm:$0xff] }
 0xa39   :  { %v2183_v49 = vsel %vm441_vm1, %v2175_v2, 0.0 }
 0xa3a   :  { %v2184_v30 = vrot.slane %v2183_v49, 4  ;;  %v4067_v0 = vpop.permute.xlu1 %2142 }
 0xa3b   :  { %v2176_v16 = vmul.f32 %v4067_v0, %v1800_v43  ;;  %v1182_v43 = vadd.f32 %v4348_v27, %v4347_v1  ;;  %v1805_v1 = vadd.f32 %v1797_v25, %v4050_v34 }
 0xa3c   :  { %v2185_v31 = vadd.f32 %v2184_v30, %v2183_v49  ;;  %v4349_v30 = vld [vmem:[#allocation17_spill] sm:$0xff] }
 0xa3d   :  { %v2190_v57 = vsel %vm441_vm1, %v2176_v16, 0.0  ;;  %v4350_v16 = vld [vmem:[#allocation35_spill] sm:$0xff] }
 0xa3e   :  { %v2186_v42 = vrot.slane %v2185_v31, 2  ;;  %v2191_v38 = vrot.slane %v2190_v57, 4  ;;  %v4071_v45 = vpop.permute.xlu1 %2147 }
 0xa3f   :  { %v2177_v22 = vmul.f32 %v4071_v45, %v1801_v47  ;;  %v1183_v47 = vadd.f32 %v4350_v16, %v4349_v30  ;;  %v4358_v30 = vld [vmem:[#allocation20_spill] sm:$0xff] }
 0xa40   :  { %v2187_v54 = vadd.f32 %v2186_v42, %v2185_v31  ;;  %v2192_v4 = vadd.f32 %v2191_v38, %v2190_v57  ;;  %v4351_v31 = vld [vmem:[#allocation16_spill] sm:$0xff]  ;;  %v1804_v42 = vadd.f32 %v4041_v63, %v1796_v13 }
 0xa41   :  { %v2197_v7 = vsel %vm441_vm1, %v2177_v22, 0.0  ;;  %v4096_v57 = vadd.f32 %v4352_v18, %v4351_v31  ;;  %v4360_v31 = vld [vmem:[#allocation12_spill] sm:$0xff] }
 0xa42   :  { %v2193_v55 = vrot.slane %v2192_v4, 2  ;;  %v2198_v14 = vrot.slane %v2197_v7, 4  ;;  %v4078_v56 = vpop.permute.xlu1 %2152  ;;  %v2188_v10 = vrot.slane %v2187_v54, 1  ;;  %v4123_v18 = vsub.s32 %v2490_v23, %v4360_v31 }
 0xa43   :  { %v2178_v37 = vmul.f32 %v4078_v56, %v1802_v9 }
 0xa44   :  { %v2194_v11 = vadd.f32 %v2193_v55, %v2192_v4  ;;  %v2199_v12 = vadd.f32 %v2198_v14, %v2197_v7  ;;  %v2189_v9 = vadd.f32 %v2188_v10, %v2187_v54  ;;  %v4102_v7 = vadd.f32 %v4354_v28, %v4353_v46  ;;  %v4355_v55 = vld [vmem:[#allocation19_spill] sm:$0xff] }
 0xa45   :  { %v2204_v58 = vsel %vm441_vm1, %v2178_v37, 0.0  ;;  %v4356_v14 = vld [vmem:[#allocation39_spill] sm:$0xff] }
 0xa46   :  { %v2195_v2 = vrot.slane %v2194_v11, 1  ;;  %v2200_v50 = vrot.slane %v2199_v12, 2  ;;  %v2205_v49 = vrot.slane %v2204_v58, 4  ;;  %v4090_v24 = vpop.permute.xlu1 %2157  ;;  %v4106_v37 = vadd.f32 %v4356_v14, %v4355_v55 }
 0xa47   :  { %v2179_v38 = vmul.f32 %v4090_v24, %v1803_v61  ;;  %v2239_v27 = vadd.f32 %v2189_v9, %v3818_v44  ;;  %v1798_v44 = vld [vmem:[#allocation7 + $0xb8] sm:$0xff] }
 0xa48   :  { %v2196_v22 = vadd.f32 %v2195_v2, %v2194_v11  ;;  %v2201_v4 = vadd.f32 %v2200_v50, %v2199_v12  ;;  %v2206_v19 = vadd.f32 %v2205_v49, %v2204_v58  ;;  %v1872_v12 = vadd.f32 %v3907_v20, %v1182_v43 }
 0xa49   :  { %v2211_v6 = vsel %vm441_vm1, %v2179_v38, 0.0 }
 0xa4a   :  { %v2240_v63 = vadd.f32 %v2196_v22, %v3830_v15  ;;  %v2575_v54 = vsel %vm516_vm2, %v2196_v22, %v2189_v9  ;;  %v2202_v61 = vrot.slane %v2201_v4, 1  ;;  %v2207_v10 = vrot.slane %v2206_v19, 2  ;;  %v4112_v11 = vpop.permute.xlu1 %2162  ;;  %v4359_v15 = vld [vmem:[#allocation40_spill] sm:$0xff] }
 0xa4b   :  { %v2212_v13 = vrot.slane %v2211_v6, 4  ;;  %v2180_v58 = vmul.f32 %v4112_v11, %v1804_v42  ;;  %v4120_v16 = vadd.f32 %v4359_v15, %v4358_v30  ;;  %v2256_v28 = vmul.f32 0.33333334, %v1872_v12 }
 0xa4c   :  { %v2271_v2 = vrot.slane %v2240_v63, 7  ;;  %v2203_v50 = vadd.f32 %v2202_v61, %v2201_v4  ;;  %v2208_v49 = vadd.f32 %v2207_v10, %v2206_v19  ;;  %v1871_v4 = vadd.f32 %v3899_v48, %v1181_v52 }
 0xa4d   :  { %v2213_v38 = vadd.f32 %v2212_v13, %v2211_v6  ;;  %v2218_v20 = vsel %vm441_vm1, %v2180_v58, 0.0  ;;  %v1873_v6 = vadd.f32 %v3901_v29, %v1183_v47  ;;  %v2359_v29 = vrot.slane %v3852_v33, %v3804_v35 }
 0xa4e   :  { %v2272_v43 = vsel %vm516_vm2, %v2271_v2, %v2239_v27  ;;  %v2241_v42 = vadd.f32 %v2203_v50, %v3840_v17  ;;  %v2209_v34 = vrot.slane %v2208_v49, 1  ;;  %v2219_v22 = vrot.slane %v2218_v20, 4  ;;  %v4128_v9 = vpop.permute.xlu1 %2167 }
 0xa4f   :  { %v2214_v19 = vrot.slane %v2213_v38, 2  ;;  %v2181_v25 = vmul.f32 %v4128_v9, %v1805_v1  ;;  %v2576_v46 = vsel %vm518_vm3, %v2203_v50, %v2575_v54  ;;  %v1806_v17 = vadd.f32 %v4046_v5, %v1798_v44 }
 0xa50   :  { %v2273_v55 = vrot.slane %v2241_v42, 6  ;;  %v2210_v14 = vadd.f32 %v2209_v34, %v2208_v49  ;;  %v2220_v23 = vadd.f32 %v2219_v22, %v2218_v20  ;;  %v2255_v54 = vmul.f32 0.33333334, %v1871_v4 }
 0xa51   :  { %v2215_v63 = vadd.f32 %v2214_v19, %v2213_v38  ;;  %v2225_v61 = vsel %vm441_vm1, %v2181_v25, 0.0  ;;  %v2498_v50 = vrot.slane %v2256_v28, %v4123_v18  ;;  %v2257_v49 = vmul.f32 0.33333334, %v1873_v6 }
 0xa52   :  { %v2274_v10 = vsel %vm518_vm3, %v2273_v55, %v2272_v43  ;;  %v2242_v48 = vadd.f32 %v2210_v14, %v3856_v32  ;;  %v2221_v52 = vrot.slane %v2220_v23, 2  ;;  %v2226_v13 = vrot.slane %v2225_v61, 4  ;;  %v4138_v58 = vpop.permute.xlu1 %2172 }
 0xa53   :  { %v2216_v12 = vrot.slane %v2215_v63, 1  ;;  %v2182_v1 = vmul.f32 %v4138_v58, %v1806_v17  ;;  %v2577_v27 = vsel %vm520_vm4, %v2210_v14, %v2576_v46  ;;  %v2494_v34 = vrot.slane %v2255_v54, %v4123_v18 }
 0xa54   :  { %v2275_v5 = vrot.slane %v2242_v48, 5  ;;  %v2222_v47 = vadd.f32 %v2221_v52, %v2220_v23  ;;  %v2227_v2 = vadd.f32 %v2226_v13, %v2225_v61  ;;  %v1874_v35 = vadd.f32 %v3903_v59, %v4096_v57  ;;  %v4361_v48 = vld [vmem:[#allocation21_spill] sm:$0xff] }
 0xa55   :  { %v2217_v32 = vadd.f32 %v2216_v12, %v2215_v63  ;;  %v2232_v30 = vsel %vm441_vm1, %v2182_v1, 0.0  ;;  %v1875_v44 = vadd.f32 %v3905_v26, %v4102_v7  ;;  %v2523_v46 = vsel %vm516_vm2, %v2498_v50, %v2494_v34 }
 0xa56   :  { %v2276_v15 = vsel %vm520_vm4, %v2275_v5, %v2274_v10  ;;  %v2223_v38 = vrot.slane %v2222_v47, 1  ;;  %v2228_v20 = vrot.slane %v2227_v2, 2  ;;  %v2233_v43 = vrot.slane %v2232_v30, 4  ;;  %v4147_v42 = vpop.permute.xlu1 %2421 }
 0xa57   :  { %v2243_v33 = vadd.f32 %v2217_v32, %v3866_v39  ;;  %v2578_v22 = vsel %vm522_vm5, %v2217_v32, %v2577_v27  ;;  %v2502_v28 = vrot.slane %v2257_v49, %v4123_v18  ;;  %v1876_v55 = vadd.f32 %v3909_v41, %v4106_v37 }
 0xa58   :  { %v2224_v4 = vadd.f32 %v2223_v38, %v2222_v47  ;;  %v2229_v19 = vadd.f32 %v2228_v20, %v2227_v2  ;;  %v2234_v25 = vadd.f32 %v2233_v43, %v2232_v30  ;;  %v4162_v63 = vmul.f32 0.33333334, %v1874_v35  ;;  %v2419_v30 = vpop.permute.xlu0 %2418 }
 0xa59   :  { %v2277_v14 = vrot.slane %v2243_v33, 4  ;;  %v2368_v26 = vadd.s32 4294967248, %v4357_v60  ;;  %v2441_v7 = vadd.s32 4294967240, %v4357_v60  ;;  %v4167_v61 = vmul.f32 0.33333334, %v1875_v44 }
 0xa5a   :  { %v2244_v59 = vadd.f32 %v2224_v4, %v3873_v62  ;;  %v2230_v57 = vrot.slane %v2229_v19, 1  ;;  %v2235_v39 = vrot.slane %v2234_v25, 2  ;;  %v2425_v23 = vpop.permute.xlu1 %2424  ;;  %v2579_v6 = vsel %vm524_vm6, %v2224_v4, %v2578_v22  ;;  %v4362_v62 = vld [vmem:[#allocation41_spill] sm:$0xff] }
 0xa5b   :  { %v2278_v17 = vsel %vm522_vm5, %v2277_v14, %v2276_v15  ;;  %v1188_v52 = vadd.f32 %v4362_v62, %v4361_v48  ;;  %v2366_v13 = vsel %vm528_vm8, %v2359_v29, %v3849_v36  ;;  %v2524_v54 = vsel %vm518_vm3, %v2502_v28, %v2523_v46 }
 0xa5c   :  { %v2279_v10 = vrot.slane %v2244_v59, 3  ;;  %v2236_v41 = vadd.f32 %v2235_v39, %v2234_v25  ;;  %v2231_v37 = vadd.f32 %v2230_v57, %v2229_v19  ;;  %v4174_v12 = vmul.f32 0.33333334, %v1876_v55  ;;  %v2437_v57 = vpop.permute.xlu0 %2436 }
 0xa5d   :  { %v2506_v2 = vrot.slane %v4162_v63, %v4123_v18  ;;  %v1877_v50 = vadd.f32 %v3921_v40, %v4120_v16  ;;  %v2371_v36 = vsub.s32 %v2368_v26, %v4360_v31  ;;  %v2444_v29 = vsub.s32 %v2441_v7, %v4360_v31 }
 0xa5e   :  { %v2280_v1 = vsel %vm524_vm6, %v2279_v10, %v2278_v17  ;;  %v2428_v60 = vpop.permute.xlu1 %2427  ;;  %v2237_v27 = vrot.slane %v2236_v41, 1  ;;  %v2245_v5 = vadd.f32 %v2231_v37, %v3882_v51  ;;  %v2580_v47 = vsel %vm526_vm7, %v2231_v37, %v2579_v6 }
 0xa5f   :  { %v2510_v49 = vrot.slane %v4167_v61, %v4123_v18  ;;  %v1878_v32 = vadd.f32 %v3931_v3, %v1188_v52  ;;  %v2514_v38 = vrot.slane %v4174_v12, %v4123_v18  ;;  %v2376_v20 = vrot.slane %v4067_v0, %v2371_v36 }
 0xa60   :  { %v2238_v15 = vadd.f32 %v2237_v27, %v2236_v41  ;;  %v2281_v51 = vrot.slane %v2245_v5, 2  ;;  %v2380_v43 = vrot.slane %v4071_v45, %v2371_v36  ;;  %v2449_v40 = vrot.slane %v4147_v42, %v2444_v29  ;;  %v2547_v5 = vpop.permute.xlu0 %2546 }
 0xa61   :  { %v2453_v16 = vrot.slane %v2425_v23, %v2444_v29  ;;  %v2261_v33 = vmul.f32 0.33333334, %v1877_v50  ;;  %v2372_v22 = vrot.slane %v4062_v8, %v2371_v36  ;;  %v2445_v44 = vrot.slane %v2419_v30, %v2444_v29 }
 0xa62   :  { %v2431_v34 = vpop.permute.xlu1 %2430  ;;  %v2246_v31 = vadd.f32 %v2238_v15, %v3889_v53  ;;  %v2282_v35 = vsel %vm526_vm7, %v2281_v51, %v2280_v1  ;;  %v2581_v3 = vsel %vm528_vm8, %v2238_v15, %v2580_v47  ;;  %v2457_v4 = vrot.slane %v2428_v60, %v2444_v29 }
 0xa63   :  { %2582 = vrot.lane.b32.xlu0 %v2581_v3, %s3066_s8  ;;  %v2262_v0 = vmul.f32 0.33333334, %v1878_v32  ;;  %v2384_v45 = vrot.slane %v4078_v56, %v2371_v36  ;;  %v2461_v19 = vrot.slane %v2431_v34, %v2444_v29  ;;  %v2401_v25 = vsel %vm516_vm2, %v2376_v20, %v2372_v22  ;;  %s3073_s8 = smov [#allocation8]  }
 0xa64   :  { %v2283_v42 = vrot.slane %v2246_v31, 1  ;;  %v2388_v53 = vrot.slane %v4090_v24, %v2371_v36  ;;  %v2474_v46 = vsel %vm516_vm2, %v2449_v40, %v2445_v44  ;;  %v2402_v28 = vsel %vm518_vm3, %v2380_v43, %v2401_v25  ;;  %s2607_s15 = sshll.u32 %s3073_s8, 4  ;;  %s2608_s15 = int_to_ptr.vmem [resolvable:$true] %s2607_s15 }
 0xa65   :  { %v2392_v8 = vrot.slane %v4112_v11, %v2371_v36  ;;  %v2475_v55 = vsel %vm518_vm3, %v2453_v16, %v2474_v46  ;;  %v2396_v56 = vrot.slane %v4128_v9, %v2371_v36  ;;  %v2403_v6 = vsel %vm520_vm4, %v2384_v45, %v2402_v28  ;;  %s3036_s16 = scalar_lea.vmem %s2608_s15, 256  ;;  %p3041_p11 = scmp.lt.s32.totalorder %s2608_s15, %s2608_s15 }
 0xa66   :  { %v2284_v14 = vsel %vm528_vm8, %v2283_v42, %v2282_v35  ;;  %v2434_v59 = vpop.permute.xlu1 %2433  ;;  %v2476_v39 = vsel %vm520_vm4, %v2457_v4, %v2475_v55  ;;  %v2400_v63 = vrot.slane %v4138_v58, %v2371_v36  ;;  %v2525_v7 = vsel %vm520_vm4, %v2506_v2, %v2524_v54  ;;  %p3037_p10 = scmp.ne.s32.totalorder %s2608_s15, %s3036_s16  ;;  %p3042_p12 = scmp.lt.s32.totalorder %s3036_s16, %s3036_s16 }
 0xa67   :  { %v2585_v24 = vsel %vm441_vm1, %v2284_v14, %v4083_v21  ;;  %v2465_v23 = vrot.slane %v2434_v59, %v2444_v29  ;;  %v2477_v11 = vsel %vm522_vm5, %v2461_v19, %v2476_v39  ;;  %v2518_v17 = vrot.slane %v2261_v33, %v4123_v18 }
 0xa68   :  { %v2587_v26 = vsel %vm2586_vm10, %v2585_v24, %v2366_v13  ;;  %v2404_v9 = vsel %vm522_vm5, %v2388_v53, %v2403_v6  ;;  %v2522_v10 = vrot.slane %v2262_v0, %v4123_v18  ;;  %v2469_v21 = vrot.slane %v2437_v57, %v2444_v29  ;;  %p3043_p13 = por %p3042_p12, %p3041_p11 }
 0xa69   :  { %v2478_v61 = vsel %vm524_vm6, %v2465_v23, %v2477_v11  ;;  %v2405_v41 = vsel %vm524_vm6, %v2392_v8, %v2404_v9  ;;  %v2526_v58 = vsel %vm522_vm5, %v2510_v49, %v2525_v7 }
 0xa6a   :  { %v2440_v37 = vpop.permute.xlu1 %2439  ;;  %v2406_v48 = vsel %vm526_vm7, %v2396_v56, %v2405_v41  ;;  %v2527_v52 = vsel %vm524_vm6, %v2514_v38, %v2526_v58  ;;  %v2479_v54 = vsel %vm526_vm7, %v2469_v21, %v2478_v61  ;;  %p3044_p0 = pnand %p3043_p13, %p3037_p10 }
 0xa6b   :  { %v2473_v62 = vrot.slane %v2440_v37, %v2444_v29  ;;  %v2407_v13 = vsel %vm528_vm8, %v2400_v63, %v2406_v48  ;;  %v2528_v18 = vsel %vm526_vm7, %v2518_v17, %v2527_v52 }
 0xa6c   :  { %v2589_v1 = vsel %vm2588_vm11, %v2587_v26, %v2407_v13  ;;  %v2529_v60 = vsel %vm528_vm8, %v2522_v10, %v2528_v18 }
 0xa6d   :  { %v2480_v12 = vsel %vm528_vm8, %v2473_v62, %v2479_v54 }
 0xa6e   :  { %v2591_v27 = vsel %vm2590_vm12, %v2589_v1, %v2480_v12  ;;  %v2565_v2 = vpop.permute.xlu1 %2564 }
 0xa6f   :  { %v2593_v47 = vsel %vm2592_vm13, %v2591_v27, %v2529_v60 }
 0xa70   :  { %v2595_v50 = vsel %vm2594_vm14, %v2593_v47, %v2547_v5 }
 0xa71   :  { %v2597_v36 = vsel %vm2596_vm15, %v2595_v50, %v2565_v2 }
 0xa72   :  { %2599 = vst [vmem:[#allocation8] sm:$0xff] %v2597_v36 }
 0xad5   :  { %v2583_v29 = vpop.permute.xlu0 %2582 }
 0xad6   :  { %v2598_v49 = vsel %vm531_vm9, %v2565_v2, %v2583_v29 }
 0xad7   :  { %2600 = vst.msk [vmem:[#allocation8 + $0x8] sm:$0xff] %vm2586_vm10, %v2598_v49 }
 0xad8   :  { %3047 = shalt.err (!%p3044_p0)
}
 0xad9   :  { %s3048_s7 = scalar_lea.hbm %s4248_s6, 256 }
 0xada   :  { %p3049_p1 = scmp.ne.s32.totalorder %s4248_s6, %s3048_s7  ;;  %p3052_p2 = scmp.lt.u32.totalorder %s3048_s7, %s4248_s6 }
 0xadc   :  { %p3054_p3 = pnand %p3052_p2, %p3049_p1 }
 0xade   :  { %3057 = shalt.err (!%p3054_p3)
}
 0xadf   :  { %2610 = dma.vmem_to_hbm [thread:$0]  %s2608_s15, 256, %s4248_s6, [#allocation4]  }
 0xae0   :  { %3062 = dma.done.wait [#allocation4], 256  }
 0xae1   :  { %3063 = vsyncadd [#allocation4], 4294967040 }
 0xae2   :  { %2614 = vsyncpa [#allocation3], 1 }
 0xae3   :  { %2615 = vsyncpa [#allocation6], 1 }
 0xae4   :  { %2616 = vsyncpa [#allocation4], 1 }

</bundles_post_ra>
